<compile_context>
chip_gen: v7x
topology: tpu7x:2x2x1
jax: 0.10.0
libtpu: 0.0.40
codegen_flags: <defaults>
</compile_context>

<pallas_src>
import functools
import math

import jax
import jax.numpy as jnp
from jax.experimental import pallas as pl
from jax.experimental.pallas import tpu as pltpu


# ----------------------------- config ---------------------------------------
class Config:
    image_size = 16          # small spatial size for the demo (CIFAR would be 32)
    channels = 3
    patch_size = 2
    embed_dim = 32
    depth = 2
    num_heads = 4
    mlp_ratio = 2.0
    num_classes = 10
    conv_stem = "tiny"       # Conv(3->32,s2)+BN+GELU + Conv(32->64,s2)+BN+GELU
    temperature = 0.6
    dropout_attn = 0.0
    dropout_embed = 0.0
    top_k = 0
    top_p = 1.0
    num_patches = (image_size // patch_size) ** 2   # unused when conv_stem != 'off'


# ----------------------------- helpers --------------------------------------
def _round_up(x, m):
    return (x + m - 1) // m * m


def _gelu(x):
    # tanh-approximate GELU (== torch.nn.GELU(approximate='tanh')): routes to the EUP
    # slot instead of a long erf polynomial on the VALU.
    # TODO(synk): nn.GELU default is the exact erf form; the tanh form deviates by
    # <= ~3e-4 abs, below the bf16-matmul noise floor used elsewhere in this kernel.
    c = math.sqrt(2.0 / math.pi)
    return 0.5 * x * (1.0 + jnp.tanh(c * (x + 0.044715 * x * x * x)))


# ----------------------------- tiled linear kernel ---------------------------
def _linear_kernel(x_ref, w_ref, b_ref, o_ref, *, activation):
    # bf16 MXU operands, f32 accumulation, f32 bias/GELU epilogue, lane-dense store.
    y = jnp.dot(x_ref[...], w_ref[...], preferred_element_type=jnp.float32)
    y = y + b_ref[...]
    if activation == "gelu":
        y = _gelu(y)
    o_ref[...] = y


def pallas_linear(x, w, b=None, activation="none", block_m=512):
    """y = x @ w + b (+ optional fused GELU).  x:(M,K) f32, w:(K,N), b:(N,).

    * x / w are cast to bf16 in the wrapper (halves HBM->VMEM DMA bytes).
    * Output channels are padded to a multiple of 128 so stores are lane-dense;
      the result is sliced back to (M, N) f32 outside the kernel.
    * Tiled over M (multiples of 8, up to block_m) so it pipelines and scales.
    """
    M, K = x.shape
    N = w.shape[1]
    if b is None:
        b = jnp.zeros((N,), jnp.float32)
    Np = _round_up(N, 128)

    xb = x.astype(jnp.bfloat16)
    wb = w.astype(jnp.float32)
    bb = b.astype(jnp.float32)
    if Np != N:
        wb = jnp.pad(wb, ((0, 0), (0, Np - N)))
        bb = jnp.pad(bb, (0, Np - N))
    wb = wb.astype(jnp.bfloat16)
    bb = bb.reshape(1, Np)

    bm = min(block_m, _round_up(M, 8))
    Mp = _round_up(M, bm)
    if Mp != M:
        xb = jnp.pad(xb, ((0, Mp - M), (0, 0)))

    out = pl.pallas_call(
        functools.partial(_linear_kernel, activation=activation),
        grid=(Mp // bm,),
        in_specs=[pl.BlockSpec((bm, K), lambda i: (i, 0)),
                  pl.BlockSpec((K, Np), lambda i: (0, 0)),
                  pl.BlockSpec((1, Np), lambda i: (0, 0))],
        out_specs=pl.BlockSpec((bm, Np), lambda i: (i, 0)),
        out_shape=jax.ShapeDtypeStruct((Mp, Np), jnp.float32),
        compiler_params=pltpu.CompilerParams(dimension_semantics=("parallel",)),
    )(xb, wb, bb)
    return out[:M, :N]


# ----------------------------- conv via im2col (NHWC) + Pallas matmul --------
def _im2col_nhwc(x, kh, kw, stride, pad):
    """x: (B,H,W,C) -> patches:(B*Ho*Wo, kh*kw*C), feature ordering (kh, kw, C)."""
    # TODO(synk): im2col is left to XLA (gather/concat) — at these tiny stem sizes it
    # is negligible; fusing window slicing into the GEMM kernel is future work.
    B, H, W, C = x.shape
    Ho = (H + 2 * pad - kh) // stride + 1
    Wo = (W + 2 * pad - kw) // stride + 1
    xp = jnp.pad(x, ((0, 0), (pad, pad), (pad, pad), (0, 0)))
    cols = []
    for i in range(kh):
        for j in range(kw):
            cols.append(xp[:, i:i + stride * Ho:stride, j:j + stride * Wo:stride, :])
    patches = jnp.concatenate(cols, axis=-1)                # (B, Ho, Wo, kh*kw*C)
    return patches.reshape(B * Ho * Wo, kh * kw * C), Ho, Wo


def pallas_conv2d(x, w_flat, bias, kh, kw, stride, pad, activation="none"):
    """Conv2d as im2col + Pallas matmul.  x NHWC, w_flat:(kh*kw*C, O).  Returns NHWC.

    NOTE: w_flat feature ordering is (kh, kw, C); importing PyTorch Conv2d weights
    (O, C, kh, kw) requires transposing to (kh, kw, C, O) before flattening.
    """
    B = x.shape[0]
    patches, Ho, Wo = _im2col_nhwc(x, kh, kw, stride, pad)
    O = w_flat.shape[1]
    y = pallas_linear(patches, w_flat, bias, activation=activation)
    return y.reshape(B, Ho, Wo, O)


def _fold_bn(w_flat, conv_bias, bn):
    """Fold eval-mode BatchNorm into the conv weight/bias."""
    s = bn["gamma"] / jnp.sqrt(bn["var"] + bn["eps"])
    w_eff = w_flat * s[None, :]
    b_eff = (conv_bias - bn["mean"]) * s + bn["beta"]
    return w_eff, b_eff


# ----------------------------- fused transformer stack ----------------------
def _stack_kernel(x_ref,
                  ln1g_ref, ln1b_ref, qkvw_ref,
                  projw_ref, projb_ref,
                  ln2g_ref, ln2b_ref,
                  w1_ref, b1_ref, w2_ref, b2_ref,
                  o_ref, acc_ref, *, num_heads, head_dim, eps):
    """One grid step = one (batch element, transformer block) pair.

    grid = (B, depth); the (N, D) token tile lives in `acc_ref` (VMEM scratch) across
    the depth axis and is written back to HBM only once per batch element.
    """
    di = pl.program_id(1)
    nd = pl.num_programs(1)
    D = num_heads * head_dim

    @pl.when(di == 0)
    def _():
        acc_ref[...] = x_ref[...]

    x = acc_ref[...]                                         # (N, D), f32

    def ln(v, g, b):
        mu = jnp.mean(v, axis=-1, keepdims=True)
        var = jnp.mean(jnp.square(v - mu), axis=-1, keepdims=True)
        return (v - mu) * jax.lax.rsqrt(var + eps) * g + b

    # ---- attention branch (temperature*scale already folded into Q weights) ----
    h = ln(x, ln1g_ref[...], ln1b_ref[...]).astype(jnp.bfloat16)
    qkv = jnp.dot(h, qkvw_ref[...], preferred_element_type=jnp.float32)   # (N, 3D) f32

    attn = jnp.zeros_like(x)                                 # (N, D) f32 accumulator
    for hi in range(num_heads):                              # static unroll, nh small
        q = qkv[:, hi * head_dim:(hi + 1) * head_dim].astype(jnp.bfloat16)
        k = qkv[:, D + hi * head_dim:D + (hi + 1) * head_dim].astype(jnp.bfloat16)
        v = qkv[:, 2 * D + hi * head_dim:2 * D + (hi + 1) * head_dim].astype(jnp.bfloat16)
        s = jax.lax.dot_general(q, k, (((1,), (1,)), ((), ())),
                                preferred_element_type=jnp.float32)       # q @ k^T, f32
        m = jnp.max(s, axis=-1, keepdims=True)
        p = jnp.exp(s - m)
        p = p / jnp.sum(p, axis=-1, keepdims=True)           # exact softmax (f32)
        head_out = jnp.dot(p.astype(jnp.bfloat16), v,
                           preferred_element_type=jnp.float32)            # (N, hd)
        # Fold the output projection into the head loop (no lane-axis concat):
        attn = attn + jnp.dot(head_out.astype(jnp.bfloat16), projw_ref[hi],
                              preferred_element_type=jnp.float32)
    x = x + attn + projb_ref[...]

    # ---- MLP branch ----
    h2 = ln(x, ln2g_ref[...], ln2b_ref[...]).astype(jnp.bfloat16)
    m1 = jnp.dot(h2, w1_ref[...], preferred_element_type=jnp.float32) + b1_ref[...]
    m1 = _gelu(m1).astype(jnp.bfloat16)
    m2 = jnp.dot(m1, w2_ref[...], preferred_element_type=jnp.float32) + b2_ref[...]
    x = x + m2

    acc_ref[...] = x

    @pl.when(di == nd - 1)
    def _():
        o_ref[...] = acc_ref[...]


def pallas_transformer_stack(x, blk, num_heads, head_dim):
    """All `depth` NKATTransformerBlocks, fused into one pallas_call.

    x: (B, N, D) f32.  blk: dict of depth-stacked parameters.
    """
    B, N, D = x.shape
    depth = blk["qkv_w"].shape[0]
    Dh = blk["mlp_w1"].shape[2]

    # Fold (head_dim^-0.5 * temperature) into the Q columns of the QKV weight.
    # PyTorch multiplies the attention scores by temperature -> multiply here too.
    # temperature stays a traced array -> no host sync, jit-friendly.
    scale = (head_dim ** -0.5) * blk["temperature"]          # (depth,)
    qkv_w = blk["qkv_w"]
    qkv_w_eff = jnp.concatenate(
        [qkv_w[..., :D] * scale[:, None, None], qkv_w[..., D:]], axis=-1
    ).astype(jnp.bfloat16)
    projw = blk["proj_w"].reshape(depth, num_heads, head_dim, D).astype(jnp.bfloat16)
    w1 = blk["mlp_w1"].astype(jnp.bfloat16)
    w2 = blk["mlp_w2"].astype(jnp.bfloat16)

    def r1(a):   # (depth, F) -> (depth, 1, F) f32
        return a.reshape(depth, 1, -1).astype(jnp.float32)

    def wspec(shape):
        n = len(shape)
        return pl.BlockSpec((None,) + shape, lambda b, d, _n=n: (d,) + (0,) * _n)

    in_specs = [
        pl.BlockSpec((None, N, D), lambda b, d: (b, 0, 0)),                      # x
        wspec((1, D)), wspec((1, D)),                                            # ln1 g,b
        wspec((D, 3 * D)),                                                       # qkv w
        pl.BlockSpec((None, num_heads, head_dim, D), lambda b, d: (d, 0, 0, 0)),  # proj w
        wspec((1, D)),                                                           # proj b
        wspec((1, D)), wspec((1, D)),                                            # ln2 g,b
        wspec((D, Dh)), wspec((1, Dh)),                                          # mlp w1,b1
        wspec((Dh, D)), wspec((1, D)),                                           # mlp w2,b2
    ]

    return pl.pallas_call(
        functools.partial(_stack_kernel, num_heads=num_heads,
                          head_dim=head_dim, eps=1e-5),
        grid=(B, depth),
        in_specs=in_specs,
        out_specs=pl.BlockSpec((None, N, D), lambda b, d: (b, 0, 0)),
        out_shape=jax.ShapeDtypeStruct((B, N, D), jnp.float32),
        scratch_shapes=[pltpu.VMEM((N, D), jnp.float32)],
        compiler_params=pltpu.CompilerParams(
            dimension_semantics=("parallel", "arbitrary")),
    )(x.astype(jnp.float32),
      r1(blk["ln1_g"]), r1(blk["ln1_b"]), qkv_w_eff,
      projw, r1(blk["proj_b"]),
      r1(blk["ln2_g"]), r1(blk["ln2_b"]),
      w1, r1(blk["mlp_b1"]), w2, r1(blk["mlp_b2"]))


# ----------------------------- fused final norm + head ----------------------
def _head_kernel(x_ref, ng_ref, nb_ref, w1_ref, b1_ref, w2_ref, b2_ref, o_ref, *, eps):
    x = x_ref[...]
    mu = jnp.mean(x, axis=-1, keepdims=True)
    var = jnp.mean(jnp.square(x - mu), axis=-1, keepdims=True)
    h = (x - mu) * jax.lax.rsqrt(var + eps) * ng_ref[...] + nb_ref[...]
    h = jnp.dot(h.astype(jnp.bfloat16), w1_ref[...],
                preferred_element_type=jnp.float32) + b1_ref[...]
    h = _gelu(h)
    o_ref[...] = jnp.dot(h.astype(jnp.bfloat16), w2_ref[...],
                         preferred_element_type=jnp.float32) + b2_ref[...]


def pallas_head(cls_tokens, params, num_classes):
    """Final LayerNorm + Linear + GELU + Linear, fused.

    Rows padded to a full 8-sublane tile; class dim padded to 128 lanes (sliced back).
    """
    B, D = cls_tokens.shape
    Dh = params["head_w1"].shape[1]
    Bp = _round_up(B, 8)
    Np = _round_up(num_classes, 128)

    x = cls_tokens.astype(jnp.float32)
    if Bp != B:
        x = jnp.pad(x, ((0, Bp - B), (0, 0)))
    w2 = jnp.pad(params["head_w2"], ((0, 0), (0, Np - num_classes))).astype(jnp.bfloat16)
    b2 = jnp.pad(params["head_b2"], (0, Np - num_classes)).reshape(1, Np).astype(jnp.float32)
    w1 = params["head_w1"].astype(jnp.bfloat16)
    b1 = params["head_b1"].reshape(1, Dh).astype(jnp.float32)

    out = pl.pallas_call(
        functools.partial(_head_kernel, eps=1e-5),
        grid=(Bp // 8,),
        in_specs=[pl.BlockSpec((8, D), lambda i: (i, 0)),
                  pl.BlockSpec((1, D), lambda i: (0, 0)),
                  pl.BlockSpec((1, D), lambda i: (0, 0)),
                  pl.BlockSpec((D, Dh), lambda i: (0, 0)),
                  pl.BlockSpec((1, Dh), lambda i: (0, 0)),
                  pl.BlockSpec((Dh, Np), lambda i: (0, 0)),
                  pl.BlockSpec((1, Np), lambda i: (0, 0))],
        out_specs=pl.BlockSpec((8, Np), lambda i: (i, 0)),
        out_shape=jax.ShapeDtypeStruct((Bp, Np), jnp.float32),
        compiler_params=pltpu.CompilerParams(dimension_semantics=("parallel",)),
    )(x, params["norm_g"].reshape(1, D).astype(jnp.float32),
      params["norm_b"].reshape(1, D).astype(jnp.float32),
      w1, b1, w2, b2)
    return out[:B, :num_classes]


# ----------------------------- parameters -----------------------------------
def init_params(key, cfg):
    ks = iter(jax.random.split(key, 64))

    def nrm(shape, std=0.02):
        return jax.random.normal(next(ks), shape, jnp.float32) * std

    D = cfg.embed_dim
    p = {}
    # ColorWiseLayerNorm
    p["color_g"] = jnp.ones((cfg.channels,), jnp.float32)
    p["color_b"] = jnp.zeros((cfg.channels,), jnp.float32)
    # ConvStem 'tiny' (weights flattened with feature ordering (kh, kw, C))
    p["stem_w1"] = nrm((cfg.channels * 9, 32))
    p["stem_b1"] = jnp.zeros((32,), jnp.float32)
    p["bn1"] = dict(gamma=jnp.ones((32,)), beta=jnp.zeros((32,)),
                    mean=jnp.zeros((32,)), var=jnp.ones((32,)), eps=1e-5)
    p["stem_w2"] = nrm((32 * 9, 64))
    p["stem_b2"] = jnp.zeros((64,), jnp.float32)
    p["bn2"] = dict(gamma=jnp.ones((64,)), beta=jnp.zeros((64,)),
                    mean=jnp.zeros((64,)), var=jnp.ones((64,)), eps=1e-5)
    stem_out = 64
    # Patch projection conv
    p["proj_w"] = nrm((stem_out * cfg.patch_size * cfg.patch_size, D))
    p["proj_b"] = jnp.zeros((D,), jnp.float32)
    # Tokens
    num_patches = (cfg.image_size // 4 // cfg.patch_size) ** 2   # conv_stem != 'off'
    p["cls_token"] = nrm((1, 1, D))
    p["pos_embed"] = nrm((1, num_patches + 1, D))
    # Transformer blocks — stacked along a leading depth axis (one fused kernel).
    mlp_hidden = int(D * cfg.mlp_ratio)
    dep = cfg.depth
    p["blocks"] = dict(
        ln1_g=jnp.ones((dep, D)), ln1_b=jnp.zeros((dep, D)),
        qkv_w=nrm((dep, D, 3 * D)),                          # bias=False
        proj_w=nrm((dep, D, D)), proj_b=jnp.zeros((dep, D)),
        temperature=jnp.full((dep,), cfg.temperature, jnp.float32),
        ln2_g=jnp.ones((dep, D)), ln2_b=jnp.zeros((dep, D)),
        mlp_w1=nrm((dep, D, mlp_hidden)), mlp_b1=jnp.zeros((dep, mlp_hidden)),
        mlp_w2=nrm((dep, mlp_hidden, D)), mlp_b2=jnp.zeros((dep, D)),
    )
    # Final norm + head
    p["norm_g"] = jnp.ones((D,)); p["norm_b"] = jnp.zeros((D,))
    p["head_w1"] = nrm((D, D // 2)); p["head_b1"] = jnp.zeros((D // 2,))
    p["head_w2"] = nrm((D // 2, cfg.num_classes)); p["head_b2"] = jnp.zeros((cfg.num_classes,))
    return p


# ----------------------------- forward --------------------------------------
def nkat_vit_forward(params, x, cfg):
    B = x.shape[0]
    C = cfg.channels
    D = cfg.embed_dim
    nh, hd = cfg.num_heads, D // cfg.num_heads

    # NCHW -> NHWC once; the whole conv stem stays channels-last.
    x = jnp.transpose(x, (0, 2, 3, 1)).astype(jnp.float32)

    # Color-wise LayerNorm (LN over 3-channel pixel vectors). Left as XLA-fused jnp:
    # a Pallas kernel here would use 3/128 lanes and masked partial stores.
    if C == 3:
        mu = jnp.mean(x, axis=-1, keepdims=True)
        var = jnp.mean(jnp.square(x - mu), axis=-1, keepdims=True)
        x = (x - mu) * jax.lax.rsqrt(var + 1e-5) * params["color_g"] + params["color_b"]

    # ConvStem 'tiny': two stride-2 conv+BN+GELU stages (BN folded, GELU fused in-kernel)
    w1, b1 = _fold_bn(params["stem_w1"], params["stem_b1"], params["bn1"])
    x = pallas_conv2d(x, w1, b1, 3, 3, stride=2, pad=1, activation="gelu")
    w2, b2 = _fold_bn(params["stem_w2"], params["stem_b2"], params["bn2"])
    x = pallas_conv2d(x, w2, b2, 3, 3, stride=2, pad=1, activation="gelu")
    # Patch projection conv (kernel = stride = patch_size)
    x = pallas_conv2d(x, params["proj_w"], params["proj_b"],
                      cfg.patch_size, cfg.patch_size,
                      stride=cfg.patch_size, pad=0)
    Bc, Hc, Wc, Dc = x.shape
    x = x.reshape(Bc, Hc * Wc, Dc)                          # (B, N_patch, D)

    # --- cls token + positional embedding ---
    cls = jnp.broadcast_to(params["cls_token"], (B, 1, D))
    x = jnp.concatenate([cls, x], axis=1) + params["pos_embed"]   # (B, N, D)

    # --- transformer stack: one fused pallas_call, grid=(B, depth) ---
    x = pallas_transformer_stack(x, params["blocks"], nh, hd)

    # --- final norm + classification head (LN is row-wise, so LN(cls) == LN(x)[:,0]) ---
    cls_out = x[:, 0]
    logits = pallas_head(cls_out, params, cfg.num_classes)
    return logits

# TODO(synk): training-only top-k / top-p attention masking and dropout are not
# implemented (module is evaluated in eval mode, where they are no-ops).


# ----------------------------- main ------------------------------------------
if __name__ == "__main__":
    cfg = Config()
    key = jax.random.PRNGKey(0)
    pkey, xkey = jax.random.split(key)
    params = init_params(pkey, cfg)
    x = jax.random.normal(xkey, (2, cfg.channels, cfg.image_size, cfg.image_size),
                          dtype=jnp.float32)
    fwd = jax.jit(functools.partial(nkat_vit_forward, cfg=cfg))
    logits = fwd(params, x)
    jax.block_until_ready(logits)
    assert logits.shape == (2, cfg.num_classes), logits.shape
    assert bool(jnp.all(jnp.isfinite(logits)))
    print("KERNEL_OK")
</pallas_src>

<mosaic_0001>
module attributes {stable_mosaic.version = 11 : i64} {
  func.func @_linear_kernel(%arg0: i32, %arg1: memref<128x27xbf16, #tpu.memory_space<vmem>>, %arg2: memref<27x128xbf16, #tpu.memory_space<vmem>>, %arg3: memref<1x128xf32, #tpu.memory_space<vmem>>, %arg4: memref<128x128xf32, #tpu.memory_space<vmem>>) attributes {dimension_semantics = [#tpu.dimension_semantics<parallel>], iteration_bounds = array<i64: 1>, scalar_prefetch = 0 : i64, scratch_operands = 0 : i64, tpu.core_type = #tpu.core_type<tc>, window_params = [{transform_indices = @transform_0, window_bounds = array<i64: 128, 27>}, {pipeline_mode = #tpu.pipeline_mode<synchronous>, transform_indices = @transform_1, window_bounds = array<i64: 27, 128>}, {pipeline_mode = #tpu.pipeline_mode<synchronous>, transform_indices = @transform_2, window_bounds = array<i64: 1, 128>}, {transform_indices = @transform_3, window_bounds = array<i64: 128, 128>}]} {
    %c0 = arith.constant 0 : index
    %c0_0 = arith.constant 0 : index
    %0 = vector.load %arg1[%c0, %c0_0] : memref<128x27xbf16, #tpu.memory_space<vmem>>, vector<128x27xbf16>
    %c0_1 = arith.constant 0 : index
    %c0_2 = arith.constant 0 : index
    %1 = vector.load %arg2[%c0_1, %c0_2] : memref<27x128xbf16, #tpu.memory_space<vmem>>, vector<27x128xbf16>
    %cst = arith.constant dense<0.000000e+00> : vector<128x128xf32>
    %2 = tpu.matmul %0, %1, %cst {dimension_numbers = #tpu.dot_dimension_numbers<[1], [0], [0], [1], [0, 0, 1, 1], [], []>} : vector<128x27xbf16>, vector<27x128xbf16>, vector<128x128xf32> -> vector<128x128xf32>
    %c0_3 = arith.constant 0 : index
    %c0_4 = arith.constant 0 : index
    %3 = vector.load %arg3[%c0_3, %c0_4] : memref<1x128xf32, #tpu.memory_space<vmem>>, vector<1x128xf32>
    %4 = vector.broadcast %3 : vector<1x128xf32> to vector<128x128xf32>
    %5 = arith.addf %2, %4 : vector<128x128xf32>
    %cst_5 = arith.constant 5.000000e-01 : f32
    %6 = vector.broadcast %cst_5 : f32 to vector<128x128xf32>
    %7 = arith.mulf %6, %5 : vector<128x128xf32>
    %cst_6 = arith.constant 4.471500e-02 : f32
    %8 = vector.broadcast %cst_6 : f32 to vector<128x128xf32>
    %9 = arith.mulf %8, %5 : vector<128x128xf32>
    %10 = arith.mulf %9, %5 : vector<128x128xf32>
    %11 = arith.mulf %10, %5 : vector<128x128xf32>
    %12 = arith.addf %5, %11 : vector<128x128xf32>
    %cst_7 = arith.constant 0.797884583 : f32
    %13 = vector.broadcast %cst_7 : f32 to vector<128x128xf32>
    %14 = arith.mulf %13, %12 : vector<128x128xf32>
    %15 = math.tanh %14 : vector<128x128xf32>
    %cst_8 = arith.constant 1.000000e+00 : f32
    %16 = vector.broadcast %cst_8 : f32 to vector<128x128xf32>
    %17 = arith.addf %16, %15 : vector<128x128xf32>
    %18 = arith.mulf %7, %17 : vector<128x128xf32>
    %c0_9 = arith.constant 0 : index
    %c0_10 = arith.constant 0 : index
    %19 = vector.load %arg4[%c0_9, %c0_10] : memref<128x128xf32, #tpu.memory_space<vmem>>, vector<128x128xf32>
    tpu.vector_store %arg4[%c0_9, %c0_10], %18 {strides = array<i32>} : memref<128x128xf32, #tpu.memory_space<vmem>>, vector<128x128xf32>,
    return
  }
  func.func @transform_0(%arg0: i32) -> (i32, i32) {
    %c0_i32 = arith.constant 0 : i32
    %c0_i32_0 = arith.constant 0 : i32
    return %arg0, %c0_i32 : i32, i32
  }
  func.func @transform_1(%arg0: i32) -> (i32, i32) {
    %c0_i32 = arith.constant 0 : i32
    %c0_i32_0 = arith.constant 0 : i32
    %c0_i32_1 = arith.constant 0 : i32
    return %c0_i32, %c0_i32_0 : i32, i32
  }
  func.func @transform_2(%arg0: i32) -> (i32, i32) {
    %c0_i32 = arith.constant 0 : i32
    %c0_i32_0 = arith.constant 0 : i32
    %c0_i32_1 = arith.constant 0 : i32
    return %c0_i32, %c0_i32_0 : i32, i32
  }
  func.func @transform_3(%arg0: i32) -> (i32, i32) {
    %c0_i32 = arith.constant 0 : i32
    %c0_i32_0 = arith.constant 0 : i32
    return %arg0, %c0_i32 : i32, i32
  }
}

module attributes {stable_mosaic.version = 11 : i64} {
  func.func @_linear_kernel(%arg0: i32, %arg1: memref<32x288xbf16, #tpu.memory_space<vmem>>, %arg2: memref<288x128xbf16, #tpu.memory_space<vmem>>, %arg3: memref<1x128xf32, #tpu.memory_space<vmem>>, %arg4: memref<32x128xf32, #tpu.memory_space<vmem>>) attributes {dimension_semantics = [#tpu.dimension_semantics<parallel>], iteration_bounds = array<i64: 1>, scalar_prefetch = 0 : i64, scratch_operands = 0 : i64, tpu.core_type = #tpu.core_type<tc>, window_params = [{transform_indices = @transform_0, window_bounds = array<i64: 32, 288>}, {pipeline_mode = #tpu.pipeline_mode<synchronous>, transform_indices = @transform_1, window_bounds = array<i64: 288, 128>}, {pipeline_mode = #tpu.pipeline_mode<synchronous>, transform_indices = @transform_2, window_bounds = array<i64: 1, 128>}, {transform_indices = @transform_3, window_bounds = array<i64: 32, 128>}]} {
    %c0 = arith.constant 0 : index
    %c0_0 = arith.constant 0 : index
    %0 = vector.load %arg1[%c0, %c0_0] : memref<32x288xbf16, #tpu.memory_space<vmem>>, vector<32x288xbf16>
    %c0_1 = arith.constant 0 : index
    %c0_2 = arith.constant 0 : index
    %1 = vector.load %arg2[%c0_1, %c0_2] : memref<288x128xbf16, #tpu.memory_space<vmem>>, vector<288x128xbf16>
    %cst = arith.constant dense<0.000000e+00> : vector<32x128xf32>
    %2 = tpu.matmul %0, %1, %cst {dimension_numbers = #tpu.dot_dimension_numbers<[1], [0], [0], [1], [0, 0, 1, 1], [], []>} : vector<32x288xbf16>, vector<288x128xbf16>, vector<32x128xf32> -> vector<32x128xf32>
    %c0_3 = arith.constant 0 : index
    %c0_4 = arith.constant 0 : index
    %3 = vector.load %arg3[%c0_3, %c0_4] : memref<1x128xf32, #tpu.memory_space<vmem>>, vector<1x128xf32>
    %4 = vector.broadcast %3 : vector<1x128xf32> to vector<32x128xf32>
    %5 = arith.addf %2, %4 : vector<32x128xf32>
    %cst_5 = arith.constant 5.000000e-01 : f32
    %6 = vector.broadcast %cst_5 : f32 to vector<32x128xf32>
    %7 = arith.mulf %6, %5 : vector<32x128xf32>
    %cst_6 = arith.constant 4.471500e-02 : f32
    %8 = vector.broadcast %cst_6 : f32 to vector<32x128xf32>
    %9 = arith.mulf %8, %5 : vector<32x128xf32>
    %10 = arith.mulf %9, %5 : vector<32x128xf32>
    %11 = arith.mulf %10, %5 : vector<32x128xf32>
    %12 = arith.addf %5, %11 : vector<32x128xf32>
    %cst_7 = arith.constant 0.797884583 : f32
    %13 = vector.broadcast %cst_7 : f32 to vector<32x128xf32>
    %14 = arith.mulf %13, %12 : vector<32x128xf32>
    %15 = math.tanh %14 : vector<32x128xf32>
    %cst_8 = arith.constant 1.000000e+00 : f32
    %16 = vector.broadcast %cst_8 : f32 to vector<32x128xf32>
    %17 = arith.addf %16, %15 : vector<32x128xf32>
    %18 = arith.mulf %7, %17 : vector<32x128xf32>
    %c0_9 = arith.constant 0 : index
    %c0_10 = arith.constant 0 : index
    %19 = vector.load %arg4[%c0_9, %c0_10] : memref<32x128xf32, #tpu.memory_space<vmem>>, vector<32x128xf32>
    tpu.vector_store %arg4[%c0_9, %c0_10], %18 {strides = array<i32>} : memref<32x128xf32, #tpu.memory_space<vmem>>, vector<32x128xf32>,
    return
  }
  func.func @transform_0(%arg0: i32) -> (i32, i32) {
    %c0_i32 = arith.constant 0 : i32
    %c0_i32_0 = arith.constant 0 : i32
    return %arg0, %c0_i32 : i32, i32
  }
  func.func @transform_1(%arg0: i32) -> (i32, i32) {
    %c0_i32 = arith.constant 0 : i32
    %c0_i32_0 = arith.constant 0 : i32
    %c0_i32_1 = arith.constant 0 : i32
    return %c0_i32, %c0_i32_0 : i32, i32
  }
  func.func @transform_2(%arg0: i32) -> (i32, i32) {
    %c0_i32 = arith.constant 0 : i32
    %c0_i32_0 = arith.constant 0 : i32
    %c0_i32_1 = arith.constant 0 : i32
    return %c0_i32, %c0_i32_0 : i32, i32
  }
  func.func @transform_3(%arg0: i32) -> (i32, i32) {
    %c0_i32 = arith.constant 0 : i32
    %c0_i32_0 = arith.constant 0 : i32
    return %arg0, %c0_i32 : i32, i32
  }
}

module attributes {stable_mosaic.version = 11 : i64} {
  func.func @_linear_kernel(%arg0: i32, %arg1: memref<8x256xbf16, #tpu.memory_space<vmem>>, %arg2: memref<256x128xbf16, #tpu.memory_space<vmem>>, %arg3: memref<1x128xf32, #tpu.memory_space<vmem>>, %arg4: memref<8x128xf32, #tpu.memory_space<vmem>>) attributes {dimension_semantics = [#tpu.dimension_semantics<parallel>], iteration_bounds = array<i64: 1>, scalar_prefetch = 0 : i64, scratch_operands = 0 : i64, tpu.core_type = #tpu.core_type<tc>, window_params = [{transform_indices = @transform_0, window_bounds = array<i64: 8, 256>}, {pipeline_mode = #tpu.pipeline_mode<synchronous>, transform_indices = @transform_1, window_bounds = array<i64: 256, 128>}, {pipeline_mode = #tpu.pipeline_mode<synchronous>, transform_indices = @transform_2, window_bounds = array<i64: 1, 128>}, {transform_indices = @transform_3, window_bounds = array<i64: 8, 128>}]} {
    %c0 = arith.constant 0 : index
    %c0_0 = arith.constant 0 : index
    %0 = vector.load %arg1[%c0, %c0_0] : memref<8x256xbf16, #tpu.memory_space<vmem>>, vector<8x256xbf16>
    %c0_1 = arith.constant 0 : index
    %c0_2 = arith.constant 0 : index
    %1 = vector.load %arg2[%c0_1, %c0_2] : memref<256x128xbf16, #tpu.memory_space<vmem>>, vector<256x128xbf16>
    %cst = arith.constant dense<0.000000e+00> : vector<8x128xf32>
    %2 = tpu.matmul %0, %1, %cst {dimension_numbers = #tpu.dot_dimension_numbers<[1], [0], [0], [1], [0, 0, 1, 1], [], []>} : vector<8x256xbf16>, vector<256x128xbf16>, vector<8x128xf32> -> vector<8x128xf32>
    %c0_3 = arith.constant 0 : index
    %c0_4 = arith.constant 0 : index
    %3 = vector.load %arg3[%c0_3, %c0_4] : memref<1x128xf32, #tpu.memory_space<vmem>>, vector<1x128xf32>
    %4 = vector.broadcast %3 : vector<1x128xf32> to vector<8x128xf32>
    %5 = arith.addf %2, %4 : vector<8x128xf32>
    %c0_5 = arith.constant 0 : index
    %c0_6 = arith.constant 0 : index
    %6 = vector.load %arg4[%c0_5, %c0_6] : memref<8x128xf32, #tpu.memory_space<vmem>>, vector<8x128xf32>
    tpu.vector_store %arg4[%c0_5, %c0_6], %5 {strides = array<i32>} : memref<8x128xf32, #tpu.memory_space<vmem>>, vector<8x128xf32>,
    return
  }
  func.func @transform_0(%arg0: i32) -> (i32, i32) {
    %c0_i32 = arith.constant 0 : i32
    %c0_i32_0 = arith.constant 0 : i32
    return %arg0, %c0_i32 : i32, i32
  }
  func.func @transform_1(%arg0: i32) -> (i32, i32) {
    %c0_i32 = arith.constant 0 : i32
    %c0_i32_0 = arith.constant 0 : i32
    %c0_i32_1 = arith.constant 0 : i32
    return %c0_i32, %c0_i32_0 : i32, i32
  }
  func.func @transform_2(%arg0: i32) -> (i32, i32) {
    %c0_i32 = arith.constant 0 : i32
    %c0_i32_0 = arith.constant 0 : i32
    %c0_i32_1 = arith.constant 0 : i32
    return %c0_i32, %c0_i32_0 : i32, i32
  }
  func.func @transform_3(%arg0: i32) -> (i32, i32) {
    %c0_i32 = arith.constant 0 : i32
    %c0_i32_0 = arith.constant 0 : i32
    return %arg0, %c0_i32 : i32, i32
  }
}

module attributes {stable_mosaic.version = 11 : i64} {
  func.func @_head_kernel(%arg0: i32, %arg1: memref<8x32xf32, #tpu.memory_space<vmem>>, %arg2: memref<1x32xf32, #tpu.memory_space<vmem>>, %arg3: memref<1x32xf32, #tpu.memory_space<vmem>>, %arg4: memref<32x16xbf16, #tpu.memory_space<vmem>>, %arg5: memref<1x16xf32, #tpu.memory_space<vmem>>, %arg6: memref<16x128xbf16, #tpu.memory_space<vmem>>, %arg7: memref<1x128xf32, #tpu.memory_space<vmem>>, %arg8: memref<8x128xf32, #tpu.memory_space<vmem>>) attributes {dimension_semantics = [#tpu.dimension_semantics<parallel>], iteration_bounds = array<i64: 1>, scalar_prefetch = 0 : i64, scratch_operands = 0 : i64, tpu.core_type = #tpu.core_type<tc>, window_params = [{transform_indices = @transform_0, window_bounds = array<i64: 8, 32>}, {pipeline_mode = #tpu.pipeline_mode<synchronous>, transform_indices = @transform_1, window_bounds = array<i64: 1, 32>}, {pipeline_mode = #tpu.pipeline_mode<synchronous>, transform_indices = @transform_2, window_bounds = array<i64: 1, 32>}, {pipeline_mode = #tpu.pipeline_mode<synchronous>, transform_indices = @transform_3, window_bounds = array<i64: 32, 16>}, {pipeline_mode = #tpu.pipeline_mode<synchronous>, transform_indices = @transform_4, window_bounds = array<i64: 1, 16>}, {pipeline_mode = #tpu.pipeline_mode<synchronous>, transform_indices = @transform_5, window_bounds = array<i64: 16, 128>}, {pipeline_mode = #tpu.pipeline_mode<synchronous>, transform_indices = @transform_6, window_bounds = array<i64: 1, 128>}, {transform_indices = @transform_7, window_bounds = array<i64: 8, 128>}]} {
    %c0 = arith.constant 0 : index
    %c0_0 = arith.constant 0 : index
    %0 = vector.load %arg1[%c0, %c0_0] : memref<8x32xf32, #tpu.memory_space<vmem>>, vector<8x32xf32>
    %cst = arith.constant dense<0.000000e+00> : vector<8xf32>
    %1 = vector.multi_reduction <add>, %0, %cst [1] : vector<8x32xf32> to vector<8xf32>
    %2 = vector.shape_cast %1 : vector<8xf32> to vector<8x1xf32>
    %cst_1 = arith.constant 3.200000e+01 : f32
    %3 = vector.broadcast %cst_1 : f32 to vector<8x1xf32>
    %4 = arith.divf %2, %3 : vector<8x1xf32>
    %5 = vector.broadcast %4 : vector<8x1xf32> to vector<8x32xf32>
    %6 = arith.subf %0, %5 : vector<8x32xf32>
    %7 = arith.mulf %6, %6 : vector<8x32xf32>
    %cst_2 = arith.constant dense<0.000000e+00> : vector<8xf32>
    %8 = vector.multi_reduction <add>, %7, %cst_2 [1] : vector<8x32xf32> to vector<8xf32>
    %9 = vector.shape_cast %8 : vector<8xf32> to vector<8x1xf32>
    %cst_3 = arith.constant 3.200000e+01 : f32
    %10 = vector.broadcast %cst_3 : f32 to vector<8x1xf32>
    %11 = arith.divf %9, %10 : vector<8x1xf32>
    %12 = vector.broadcast %4 : vector<8x1xf32> to vector<8x32xf32>
    %13 = arith.subf %0, %12 : vector<8x32xf32>
    %cst_4 = arith.constant 9.99999974E-6 : f32
    %14 = vector.broadcast %cst_4 : f32 to vector<8x1xf32>
    %15 = arith.addf %11, %14 : vector<8x1xf32>
    %16 = math.rsqrt %15 : vector<8x1xf32>
    %17 = vector.broadcast %16 : vector<8x1xf32> to vector<8x32xf32>
    %18 = arith.mulf %13, %17 : vector<8x32xf32>
    %c0_5 = arith.constant 0 : index
    %c0_6 = arith.constant 0 : index
    %19 = vector.load %arg2[%c0_5, %c0_6] : memref<1x32xf32, #tpu.memory_space<vmem>>, vector<1x32xf32>
    %20 = vector.broadcast %19 : vector<1x32xf32> to vector<8x32xf32>
    %21 = arith.mulf %18, %20 : vector<8x32xf32>
    %c0_7 = arith.constant 0 : index
    %c0_8 = arith.constant 0 : index
    %22 = vector.load %arg3[%c0_7, %c0_8] : memref<1x32xf32, #tpu.memory_space<vmem>>, vector<1x32xf32>
    %23 = vector.broadcast %22 : vector<1x32xf32> to vector<8x32xf32>
    %24 = arith.addf %21, %23 : vector<8x32xf32>
    %25 = arith.truncf %24 : vector<8x32xf32> to vector<8x32xbf16>
    %c0_9 = arith.constant 0 : index
    %c0_10 = arith.constant 0 : index
    %26 = vector.load %arg4[%c0_9, %c0_10] : memref<32x16xbf16, #tpu.memory_space<vmem>>, vector<32x16xbf16>
    %cst_11 = arith.constant dense<0.000000e+00> : vector<8x16xf32>
    %27 = tpu.matmul %25, %26, %cst_11 {dimension_numbers = #tpu.dot_dimension_numbers<[1], [0], [0], [1], [0, 0, 1, 1], [], []>} : vector<8x32xbf16>, vector<32x16xbf16>, vector<8x16xf32> -> vector<8x16xf32>
    %c0_12 = arith.constant 0 : index
    %c0_13 = arith.constant 0 : index
    %28 = vector.load %arg5[%c0_12, %c0_13] : memref<1x16xf32, #tpu.memory_space<vmem>>, vector<1x16xf32>
    %29 = vector.broadcast %28 : vector<1x16xf32> to vector<8x16xf32>
    %30 = arith.addf %27, %29 : vector<8x16xf32>
    %cst_14 = arith.constant 5.000000e-01 : f32
    %31 = vector.broadcast %cst_14 : f32 to vector<8x16xf32>
    %32 = arith.mulf %31, %30 : vector<8x16xf32>
    %cst_15 = arith.constant 4.471500e-02 : f32
    %33 = vector.broadcast %cst_15 : f32 to vector<8x16xf32>
    %34 = arith.mulf %33, %30 : vector<8x16xf32>
    %35 = arith.mulf %34, %30 : vector<8x16xf32>
    %36 = arith.mulf %35, %30 : vector<8x16xf32>
    %37 = arith.addf %30, %36 : vector<8x16xf32>
    %cst_16 = arith.constant 0.797884583 : f32
    %38 = vector.broadcast %cst_16 : f32 to vector<8x16xf32>
    %39 = arith.mulf %38, %37 : vector<8x16xf32>
    %40 = math.tanh %39 : vector<8x16xf32>
    %cst_17 = arith.constant 1.000000e+00 : f32
    %41 = vector.broadcast %cst_17 : f32 to vector<8x16xf32>
    %42 = arith.addf %41, %40 : vector<8x16xf32>
    %43 = arith.mulf %32, %42 : vector<8x16xf32>
    %44 = arith.truncf %43 : vector<8x16xf32> to vector<8x16xbf16>
    %c0_18 = arith.constant 0 : index
    %c0_19 = arith.constant 0 : index
    %45 = vector.load %arg6[%c0_18, %c0_19] : memref<16x128xbf16, #tpu.memory_space<vmem>>, vector<16x128xbf16>
    %cst_20 = arith.constant dense<0.000000e+00> : vector<8x128xf32>
    %46 = tpu.matmul %44, %45, %cst_20 {dimension_numbers = #tpu.dot_dimension_numbers<[1], [0], [0], [1], [0, 0, 1, 1], [], []>} : vector<8x16xbf16>, vector<16x128xbf16>, vector<8x128xf32> -> vector<8x128xf32>
    %c0_21 = arith.constant 0 : index
    %c0_22 = arith.constant 0 : index
    %47 = vector.load %arg7[%c0_21, %c0_22] : memref<1x128xf32, #tpu.memory_space<vmem>>, vector<1x128xf32>
    %48 = vector.broadcast %47 : vector<1x128xf32> to vector<8x128xf32>
    %49 = arith.addf %46, %48 : vector<8x128xf32>
    %c0_23 = arith.constant 0 : index
    %c0_24 = arith.constant 0 : index
    %50 = vector.load %arg8[%c0_23, %c0_24] : memref<8x128xf32, #tpu.memory_space<vmem>>, vector<8x128xf32>
    tpu.vector_store %arg8[%c0_23, %c0_24], %49 {strides = array<i32>} : memref<8x128xf32, #tpu.memory_space<vmem>>, vector<8x128xf32>,
    return
  }
  func.func @transform_0(%arg0: i32) -> (i32, i32) {
    %c0_i32 = arith.constant 0 : i32
    %c0_i32_0 = arith.constant 0 : i32
    return %arg0, %c0_i32 : i32, i32
  }
  func.func @transform_1(%arg0: i32) -> (i32, i32) {
    %c0_i32 = arith.constant 0 : i32
    %c0_i32_0 = arith.constant 0 : i32
    %c0_i32_1 = arith.constant 0 : i32
    return %c0_i32, %c0_i32_0 : i32, i32
  }
  func.func @transform_2(%arg0: i32) -> (i32, i32) {
    %c0_i32 = arith.constant 0 : i32
    %c0_i32_0 = arith.constant 0 : i32
    %c0_i32_1 = arith.constant 0 : i32
    return %c0_i32, %c0_i32_0 : i32, i32
  }
  func.func @transform_3(%arg0: i32) -> (i32, i32) {
    %c0_i32 = arith.constant 0 : i32
    %c0_i32_0 = arith.constant 0 : i32
    %c0_i32_1 = arith.constant 0 : i32
    return %c0_i32, %c0_i32_0 : i32, i32
  }
  func.func @transform_4(%arg0: i32) -> (i32, i32) {
    %c0_i32 = arith.constant 0 : i32
    %c0_i32_0 = arith.constant 0 : i32
    %c0_i32_1 = arith.constant 0 : i32
    return %c0_i32, %c0_i32_0 : i32, i32
  }
  func.func @transform_5(%arg0: i32) -> (i32, i32) {
    %c0_i32 = arith.constant 0 : i32
    %c0_i32_0 = arith.constant 0 : i32
    %c0_i32_1 = arith.constant 0 : i32
    return %c0_i32, %c0_i32_0 : i32, i32
  }
  func.func @transform_6(%arg0: i32) -> (i32, i32) {
    %c0_i32 = arith.constant 0 : i32
    %c0_i32_0 = arith.constant 0 : i32
    %c0_i32_1 = arith.constant 0 : i32
    return %c0_i32, %c0_i32_0 : i32, i32
  }
  func.func @transform_7(%arg0: i32) -> (i32, i32) {
    %c0_i32 = arith.constant 0 : i32
    %c0_i32_0 = arith.constant 0 : i32
    return %arg0, %c0_i32 : i32, i32
  }
}

module attributes {stable_mosaic.version = 11 : i64} {
  func.func @_stack_kernel(%arg0: i32, %arg1: i32, %arg2: memref<1x5x32xf32, #tpu.memory_space<vmem>>, %arg3: memref<1x1x32xf32, #tpu.memory_space<vmem>>, %arg4: memref<1x1x32xf32, #tpu.memory_space<vmem>>, %arg5: memref<1x32x96xbf16, #tpu.memory_space<vmem>>, %arg6: memref<1x4x8x32xbf16, #tpu.memory_space<vmem>>, %arg7: memref<1x1x32xf32, #tpu.memory_space<vmem>>, %arg8: memref<1x1x32xf32, #tpu.memory_space<vmem>>, %arg9: memref<1x1x32xf32, #tpu.memory_space<vmem>>, %arg10: memref<1x32x64xbf16, #tpu.memory_space<vmem>>, %arg11: memref<1x1x64xf32, #tpu.memory_space<vmem>>, %arg12: memref<1x64x32xbf16, #tpu.memory_space<vmem>>, %arg13: memref<1x1x32xf32, #tpu.memory_space<vmem>>, %arg14: memref<1x5x32xf32, #tpu.memory_space<vmem>>, %arg15: memref<5x32xf32, #tpu.memory_space<vmem>>) attributes {dimension_semantics = [#tpu.dimension_semantics<parallel>, #tpu.dimension_semantics<arbitrary>], iteration_bounds = array<i64: 2, 2>, scalar_prefetch = 0 : i64, scratch_operands = 1 : i64, tpu.core_type = #tpu.core_type<tc>, window_params = [{transform_indices = @transform_0, window_bounds = array<i64: 1, 5, 32>}, {transform_indices = @transform_1, window_bounds = array<i64: 1, 1, 32>}, {transform_indices = @transform_2, window_bounds = array<i64: 1, 1, 32>}, {transform_indices = @transform_3, window_bounds = array<i64: 1, 32, 96>}, {transform_indices = @transform_4, window_bounds = array<i64: 1, 4, 8, 32>}, {transform_indices = @transform_5, window_bounds = array<i64: 1, 1, 32>}, {transform_indices = @transform_6, window_bounds = array<i64: 1, 1, 32>}, {transform_indices = @transform_7, window_bounds = array<i64: 1, 1, 32>}, {transform_indices = @transform_8, window_bounds = array<i64: 1, 32, 64>}, {transform_indices = @transform_9, window_bounds = array<i64: 1, 1, 64>}, {transform_indices = @transform_10, window_bounds = array<i64: 1, 64, 32>}, {transform_indices = @transform_11, window_bounds = array<i64: 1, 1, 32>}, {transform_indices = @transform_12, window_bounds = array<i64: 1, 5, 32>}]} {
    %c0_i32 = arith.constant 0 : i32
    %0 = arith.cmpi eq, %arg1, %c0_i32 : i32
    %1 = arith.extui %0 : i1 to i32
    %c0_i32_0 = arith.constant 0 : i32
    %2 = arith.cmpi ne, %1, %c0_i32_0 : i32
    scf.if %2 {
      %c0_85 = arith.constant 0 : index
      %c0_86 = arith.constant 0 : index
      %c0_87 = arith.constant 0 : index
      %192 = vector.load %arg2[%c0_85, %c0_86, %c0_87] : memref<1x5x32xf32, #tpu.memory_space<vmem>>, vector<1x5x32xf32>
      %193 = vector.shape_cast %192 : vector<1x5x32xf32> to vector<5x32xf32>
      %c0_88 = arith.constant 0 : index
      %c0_89 = arith.constant 0 : index
      %194 = vector.load %arg15[%c0_88, %c0_89] : memref<5x32xf32, #tpu.memory_space<vmem>>, vector<5x32xf32>
      tpu.vector_store %arg15[%c0_88, %c0_89], %193 {strides = array<i32>} : memref<5x32xf32, #tpu.memory_space<vmem>>, vector<5x32xf32>,
    } else {
    }
    %c0 = arith.constant 0 : index
    %c0_1 = arith.constant 0 : index
    %3 = vector.load %arg15[%c0, %c0_1] : memref<5x32xf32, #tpu.memory_space<vmem>>, vector<5x32xf32>
    %c0_2 = arith.constant 0 : index
    %c0_3 = arith.constant 0 : index
    %c0_4 = arith.constant 0 : index
    %4 = vector.load %arg3[%c0_2, %c0_3, %c0_4] : memref<1x1x32xf32, #tpu.memory_space<vmem>>, vector<1x1x32xf32>
    %5 = vector.shape_cast %4 : vector<1x1x32xf32> to vector<1x32xf32>
    %c0_5 = arith.constant 0 : index
    %c0_6 = arith.constant 0 : index
    %c0_7 = arith.constant 0 : index
    %6 = vector.load %arg4[%c0_5, %c0_6, %c0_7] : memref<1x1x32xf32, #tpu.memory_space<vmem>>, vector<1x1x32xf32>
    %7 = vector.shape_cast %6 : vector<1x1x32xf32> to vector<1x32xf32>
    %cst = arith.constant dense<0.000000e+00> : vector<5xf32>
    %8 = vector.multi_reduction <add>, %3, %cst [1] : vector<5x32xf32> to vector<5xf32>
    %9 = vector.shape_cast %8 : vector<5xf32> to vector<5x1xf32>
    %cst_8 = arith.constant 3.200000e+01 : f32
    %10 = vector.broadcast %cst_8 : f32 to vector<5x1xf32>
    %11 = arith.divf %9, %10 : vector<5x1xf32>
    %12 = vector.broadcast %11 : vector<5x1xf32> to vector<5x32xf32>
    %13 = arith.subf %3, %12 : vector<5x32xf32>
    %14 = arith.mulf %13, %13 : vector<5x32xf32>
    %cst_9 = arith.constant dense<0.000000e+00> : vector<5xf32>
    %15 = vector.multi_reduction <add>, %14, %cst_9 [1] : vector<5x32xf32> to vector<5xf32>
    %16 = vector.shape_cast %15 : vector<5xf32> to vector<5x1xf32>
    %cst_10 = arith.constant 3.200000e+01 : f32
    %17 = vector.broadcast %cst_10 : f32 to vector<5x1xf32>
    %18 = arith.divf %16, %17 : vector<5x1xf32>
    %19 = vector.broadcast %11 : vector<5x1xf32> to vector<5x32xf32>
    %20 = arith.subf %3, %19 : vector<5x32xf32>
    %cst_11 = arith.constant 9.99999974E-6 : f32
    %21 = vector.broadcast %cst_11 : f32 to vector<5x1xf32>
    %22 = arith.addf %18, %21 : vector<5x1xf32>
    %23 = math.rsqrt %22 : vector<5x1xf32>
    %24 = vector.broadcast %23 : vector<5x1xf32> to vector<5x32xf32>
    %25 = arith.mulf %20, %24 : vector<5x32xf32>
    %26 = vector.broadcast %5 : vector<1x32xf32> to vector<5x32xf32>
    %27 = arith.mulf %25, %26 : vector<5x32xf32>
    %28 = vector.broadcast %7 : vector<1x32xf32> to vector<5x32xf32>
    %29 = arith.addf %27, %28 : vector<5x32xf32>
    %30 = arith.truncf %29 : vector<5x32xf32> to vector<5x32xbf16>
    %c0_12 = arith.constant 0 : index
    %c0_13 = arith.constant 0 : index
    %c0_14 = arith.constant 0 : index
    %31 = vector.load %arg5[%c0_12, %c0_13, %c0_14] : memref<1x32x96xbf16, #tpu.memory_space<vmem>>, vector<1x32x96xbf16>
    %32 = vector.shape_cast %31 : vector<1x32x96xbf16> to vector<32x96xbf16>
    %cst_15 = arith.constant dense<0.000000e+00> : vector<5x96xf32>
    %33 = tpu.matmul %30, %32, %cst_15 {dimension_numbers = #tpu.dot_dimension_numbers<[1], [0], [0], [1], [0, 0, 1, 1], [], []>} : vector<5x32xbf16>, vector<32x96xbf16>, vector<5x96xf32> -> vector<5x96xf32>
    %cst_16 = arith.constant 0.000000e+00 : f32
    %34 = vector.broadcast %cst_16 : f32 to vector<5x32xf32>
    %35 = vector.extract_strided_slice %33 {offsets = [0, 0], sizes = [5, 8], strides = [1, 1]} : vector<5x96xf32> to vector<5x8xf32>
    %36 = arith.truncf %35 : vector<5x8xf32> to vector<5x8xbf16>
    %37 = vector.extract_strided_slice %33 {offsets = [0, 32], sizes = [5, 8], strides = [1, 1]} : vector<5x96xf32> to vector<5x8xf32>
    %38 = arith.truncf %37 : vector<5x8xf32> to vector<5x8xbf16>
    %39 = vector.extract_strided_slice %33 {offsets = [0, 64], sizes = [5, 8], strides = [1, 1]} : vector<5x96xf32> to vector<5x8xf32>
    %40 = arith.truncf %39 : vector<5x8xf32> to vector<5x8xbf16>
    %cst_17 = arith.constant dense<0.000000e+00> : vector<5x5xf32>
    %41 = tpu.matmul %36, %38, %cst_17 {dimension_numbers = #tpu.dot_dimension_numbers<[1], [1], [0], [0], [0, 0, 1, 0], [], []>} : vector<5x8xbf16>, vector<5x8xbf16>, vector<5x5xf32> -> vector<5x5xf32>
    %cst_18 = arith.constant dense<0xFF800000> : vector<5xf32>
    %42 = vector.multi_reduction <maximumf>, %41, %cst_18 [1] : vector<5x5xf32> to vector<5xf32>
    %43 = vector.shape_cast %42 : vector<5xf32> to vector<5x1xf32>
    %44 = vector.broadcast %43 : vector<5x1xf32> to vector<5x5xf32>
    %45 = arith.subf %41, %44 : vector<5x5xf32>
    %46 = math.exp %45 : vector<5x5xf32>
    %cst_19 = arith.constant dense<0.000000e+00> : vector<5xf32>
    %47 = vector.multi_reduction <add>, %46, %cst_19 [1] : vector<5x5xf32> to vector<5xf32>
    %48 = vector.shape_cast %47 : vector<5xf32> to vector<5x1xf32>
    %49 = vector.broadcast %48 : vector<5x1xf32> to vector<5x5xf32>
    %50 = arith.divf %46, %49 : vector<5x5xf32>
    %51 = arith.truncf %50 : vector<5x5xf32> to vector<5x5xbf16>
    %cst_20 = arith.constant dense<0.000000e+00> : vector<5x8xf32>
    %52 = tpu.matmul %51, %40, %cst_20 {dimension_numbers = #tpu.dot_dimension_numbers<[1], [0], [0], [1], [0, 0, 1, 1], [], []>} : vector<5x5xbf16>, vector<5x8xbf16>, vector<5x8xf32> -> vector<5x8xf32>
    %53 = arith.truncf %52 : vector<5x8xf32> to vector<5x8xbf16>
    %c0_21 = arith.constant 0 : index
    %c0_22 = arith.constant 0 : index
    %c0_23 = arith.constant 0 : index
    %c0_24 = arith.constant 0 : index
    %54 = vector.load %arg6[%c0_21, %c0_22, %c0_23, %c0_24] : memref<1x4x8x32xbf16, #tpu.memory_space<vmem>>, vector<1x1x8x32xbf16>
    %55 = vector.shape_cast %54 : vector<1x1x8x32xbf16> to vector<8x32xbf16>
    %cst_25 = arith.constant dense<0.000000e+00> : vector<5x32xf32>
    %56 = tpu.matmul %53, %55, %cst_25 {dimension_numbers = #tpu.dot_dimension_numbers<[1], [0], [0], [1], [0, 0, 1, 1], [], []>} : vector<5x8xbf16>, vector<8x32xbf16>, vector<5x32xf32> -> vector<5x32xf32>
    %57 = arith.addf %34, %56 : vector<5x32xf32>
    %58 = vector.extract_strided_slice %33 {offsets = [0, 8], sizes = [5, 8], strides = [1, 1]} : vector<5x96xf32> to vector<5x8xf32>
    %59 = arith.truncf %58 : vector<5x8xf32> to vector<5x8xbf16>
    %60 = vector.extract_strided_slice %33 {offsets = [0, 40], sizes = [5, 8], strides = [1, 1]} : vector<5x96xf32> to vector<5x8xf32>
    %61 = arith.truncf %60 : vector<5x8xf32> to vector<5x8xbf16>
    %62 = vector.extract_strided_slice %33 {offsets = [0, 72], sizes = [5, 8], strides = [1, 1]} : vector<5x96xf32> to vector<5x8xf32>
    %63 = arith.truncf %62 : vector<5x8xf32> to vector<5x8xbf16>
    %cst_26 = arith.constant dense<0.000000e+00> : vector<5x5xf32>
    %64 = tpu.matmul %59, %61, %cst_26 {dimension_numbers = #tpu.dot_dimension_numbers<[1], [1], [0], [0], [0, 0, 1, 0], [], []>} : vector<5x8xbf16>, vector<5x8xbf16>, vector<5x5xf32> -> vector<5x5xf32>
    %cst_27 = arith.constant dense<0xFF800000> : vector<5xf32>
    %65 = vector.multi_reduction <maximumf>, %64, %cst_27 [1] : vector<5x5xf32> to vector<5xf32>
    %66 = vector.shape_cast %65 : vector<5xf32> to vector<5x1xf32>
    %67 = vector.broadcast %66 : vector<5x1xf32> to vector<5x5xf32>
    %68 = arith.subf %64, %67 : vector<5x5xf32>
    %69 = math.exp %68 : vector<5x5xf32>
    %cst_28 = arith.constant dense<0.000000e+00> : vector<5xf32>
    %70 = vector.multi_reduction <add>, %69, %cst_28 [1] : vector<5x5xf32> to vector<5xf32>
    %71 = vector.shape_cast %70 : vector<5xf32> to vector<5x1xf32>
    %72 = vector.broadcast %71 : vector<5x1xf32> to vector<5x5xf32>
    %73 = arith.divf %69, %72 : vector<5x5xf32>
    %74 = arith.truncf %73 : vector<5x5xf32> to vector<5x5xbf16>
    %cst_29 = arith.constant dense<0.000000e+00> : vector<5x8xf32>
    %75 = tpu.matmul %74, %63, %cst_29 {dimension_numbers = #tpu.dot_dimension_numbers<[1], [0], [0], [1], [0, 0, 1, 1], [], []>} : vector<5x5xbf16>, vector<5x8xbf16>, vector<5x8xf32> -> vector<5x8xf32>
    %76 = arith.truncf %75 : vector<5x8xf32> to vector<5x8xbf16>
    %c0_30 = arith.constant 0 : index
    %c1 = arith.constant 1 : index
    %c0_31 = arith.constant 0 : index
    %c0_32 = arith.constant 0 : index
    %77 = vector.load %arg6[%c0_30, %c1, %c0_31, %c0_32] : memref<1x4x8x32xbf16, #tpu.memory_space<vmem>>, vector<1x1x8x32xbf16>
    %78 = vector.shape_cast %77 : vector<1x1x8x32xbf16> to vector<8x32xbf16>
    %cst_33 = arith.constant dense<0.000000e+00> : vector<5x32xf32>
    %79 = tpu.matmul %76, %78, %cst_33 {dimension_numbers = #tpu.dot_dimension_numbers<[1], [0], [0], [1], [0, 0, 1, 1], [], []>} : vector<5x8xbf16>, vector<8x32xbf16>, vector<5x32xf32> -> vector<5x32xf32>
    %80 = arith.addf %57, %79 : vector<5x32xf32>
    %81 = vector.extract_strided_slice %33 {offsets = [0, 16], sizes = [5, 8], strides = [1, 1]} : vector<5x96xf32> to vector<5x8xf32>
    %82 = arith.truncf %81 : vector<5x8xf32> to vector<5x8xbf16>
    %83 = vector.extract_strided_slice %33 {offsets = [0, 48], sizes = [5, 8], strides = [1, 1]} : vector<5x96xf32> to vector<5x8xf32>
    %84 = arith.truncf %83 : vector<5x8xf32> to vector<5x8xbf16>
    %85 = vector.extract_strided_slice %33 {offsets = [0, 80], sizes = [5, 8], strides = [1, 1]} : vector<5x96xf32> to vector<5x8xf32>
    %86 = arith.truncf %85 : vector<5x8xf32> to vector<5x8xbf16>
    %cst_34 = arith.constant dense<0.000000e+00> : vector<5x5xf32>
    %87 = tpu.matmul %82, %84, %cst_34 {dimension_numbers = #tpu.dot_dimension_numbers<[1], [1], [0], [0], [0, 0, 1, 0], [], []>} : vector<5x8xbf16>, vector<5x8xbf16>, vector<5x5xf32> -> vector<5x5xf32>
    %cst_35 = arith.constant dense<0xFF800000> : vector<5xf32>
    %88 = vector.multi_reduction <maximumf>, %87, %cst_35 [1] : vector<5x5xf32> to vector<5xf32>
    %89 = vector.shape_cast %88 : vector<5xf32> to vector<5x1xf32>
    %90 = vector.broadcast %89 : vector<5x1xf32> to vector<5x5xf32>
    %91 = arith.subf %87, %90 : vector<5x5xf32>
    %92 = math.exp %91 : vector<5x5xf32>
    %cst_36 = arith.constant dense<0.000000e+00> : vector<5xf32>
    %93 = vector.multi_reduction <add>, %92, %cst_36 [1] : vector<5x5xf32> to vector<5xf32>
    %94 = vector.shape_cast %93 : vector<5xf32> to vector<5x1xf32>
    %95 = vector.broadcast %94 : vector<5x1xf32> to vector<5x5xf32>
    %96 = arith.divf %92, %95 : vector<5x5xf32>
    %97 = arith.truncf %96 : vector<5x5xf32> to vector<5x5xbf16>
    %cst_37 = arith.constant dense<0.000000e+00> : vector<5x8xf32>
    %98 = tpu.matmul %97, %86, %cst_37 {dimension_numbers = #tpu.dot_dimension_numbers<[1], [0], [0], [1], [0, 0, 1, 1], [], []>} : vector<5x5xbf16>, vector<5x8xbf16>, vector<5x8xf32> -> vector<5x8xf32>
    %99 = arith.truncf %98 : vector<5x8xf32> to vector<5x8xbf16>
    %c0_38 = arith.constant 0 : index
    %c2 = arith.constant 2 : index
    %c0_39 = arith.constant 0 : index
    %c0_40 = arith.constant 0 : index
    %100 = vector.load %arg6[%c0_38, %c2, %c0_39, %c0_40] : memref<1x4x8x32xbf16, #tpu.memory_space<vmem>>, vector<1x1x8x32xbf16>
    %101 = vector.shape_cast %100 : vector<1x1x8x32xbf16> to vector<8x32xbf16>
    %cst_41 = arith.constant dense<0.000000e+00> : vector<5x32xf32>
    %102 = tpu.matmul %99, %101, %cst_41 {dimension_numbers = #tpu.dot_dimension_numbers<[1], [0], [0], [1], [0, 0, 1, 1], [], []>} : vector<5x8xbf16>, vector<8x32xbf16>, vector<5x32xf32> -> vector<5x32xf32>
    %103 = arith.addf %80, %102 : vector<5x32xf32>
    %104 = vector.extract_strided_slice %33 {offsets = [0, 24], sizes = [5, 8], strides = [1, 1]} : vector<5x96xf32> to vector<5x8xf32>
    %105 = arith.truncf %104 : vector<5x8xf32> to vector<5x8xbf16>
    %106 = vector.extract_strided_slice %33 {offsets = [0, 56], sizes = [5, 8], strides = [1, 1]} : vector<5x96xf32> to vector<5x8xf32>
    %107 = arith.truncf %106 : vector<5x8xf32> to vector<5x8xbf16>
    %108 = vector.extract_strided_slice %33 {offsets = [0, 88], sizes = [5, 8], strides = [1, 1]} : vector<5x96xf32> to vector<5x8xf32>
    %109 = arith.truncf %108 : vector<5x8xf32> to vector<5x8xbf16>
    %cst_42 = arith.constant dense<0.000000e+00> : vector<5x5xf32>
    %110 = tpu.matmul %105, %107, %cst_42 {dimension_numbers = #tpu.dot_dimension_numbers<[1], [1], [0], [0], [0, 0, 1, 0], [], []>} : vector<5x8xbf16>, vector<5x8xbf16>, vector<5x5xf32> -> vector<5x5xf32>
    %cst_43 = arith.constant dense<0xFF800000> : vector<5xf32>
    %111 = vector.multi_reduction <maximumf>, %110, %cst_43 [1] : vector<5x5xf32> to vector<5xf32>
    %112 = vector.shape_cast %111 : vector<5xf32> to vector<5x1xf32>
    %113 = vector.broadcast %112 : vector<5x1xf32> to vector<5x5xf32>
    %114 = arith.subf %110, %113 : vector<5x5xf32>
    %115 = math.exp %114 : vector<5x5xf32>
    %cst_44 = arith.constant dense<0.000000e+00> : vector<5xf32>
    %116 = vector.multi_reduction <add>, %115, %cst_44 [1] : vector<5x5xf32> to vector<5xf32>
    %117 = vector.shape_cast %116 : vector<5xf32> to vector<5x1xf32>
    %118 = vector.broadcast %117 : vector<5x1xf32> to vector<5x5xf32>
    %119 = arith.divf %115, %118 : vector<5x5xf32>
    %120 = arith.truncf %119 : vector<5x5xf32> to vector<5x5xbf16>
    %cst_45 = arith.constant dense<0.000000e+00> : vector<5x8xf32>
    %121 = tpu.matmul %120, %109, %cst_45 {dimension_numbers = #tpu.dot_dimension_numbers<[1], [0], [0], [1], [0, 0, 1, 1], [], []>} : vector<5x5xbf16>, vector<5x8xbf16>, vector<5x8xf32> -> vector<5x8xf32>
    %122 = arith.truncf %121 : vector<5x8xf32> to vector<5x8xbf16>
    %c0_46 = arith.constant 0 : index
    %c3 = arith.constant 3 : index
    %c0_47 = arith.constant 0 : index
    %c0_48 = arith.constant 0 : index
    %123 = vector.load %arg6[%c0_46, %c3, %c0_47, %c0_48] : memref<1x4x8x32xbf16, #tpu.memory_space<vmem>>, vector<1x1x8x32xbf16>
    %124 = vector.shape_cast %123 : vector<1x1x8x32xbf16> to vector<8x32xbf16>
    %cst_49 = arith.constant dense<0.000000e+00> : vector<5x32xf32>
    %125 = tpu.matmul %122, %124, %cst_49 {dimension_numbers = #tpu.dot_dimension_numbers<[1], [0], [0], [1], [0, 0, 1, 1], [], []>} : vector<5x8xbf16>, vector<8x32xbf16>, vector<5x32xf32> -> vector<5x32xf32>
    %126 = arith.addf %103, %125 : vector<5x32xf32>
    %127 = arith.addf %3, %126 : vector<5x32xf32>
    %c0_50 = arith.constant 0 : index
    %c0_51 = arith.constant 0 : index
    %c0_52 = arith.constant 0 : index
    %128 = vector.load %arg7[%c0_50, %c0_51, %c0_52] : memref<1x1x32xf32, #tpu.memory_space<vmem>>, vector<1x1x32xf32>
    %129 = vector.shape_cast %128 : vector<1x1x32xf32> to vector<1x32xf32>
    %130 = vector.broadcast %129 : vector<1x32xf32> to vector<5x32xf32>
    %131 = arith.addf %127, %130 : vector<5x32xf32>
    %c0_53 = arith.constant 0 : index
    %c0_54 = arith.constant 0 : index
    %c0_55 = arith.constant 0 : index
    %132 = vector.load %arg8[%c0_53, %c0_54, %c0_55] : memref<1x1x32xf32, #tpu.memory_space<vmem>>, vector<1x1x32xf32>
    %133 = vector.shape_cast %132 : vector<1x1x32xf32> to vector<1x32xf32>
    %c0_56 = arith.constant 0 : index
    %c0_57 = arith.constant 0 : index
    %c0_58 = arith.constant 0 : index
    %134 = vector.load %arg9[%c0_56, %c0_57, %c0_58] : memref<1x1x32xf32, #tpu.memory_space<vmem>>, vector<1x1x32xf32>
    %135 = vector.shape_cast %134 : vector<1x1x32xf32> to vector<1x32xf32>
    %cst_59 = arith.constant dense<0.000000e+00> : vector<5xf32>
    %136 = vector.multi_reduction <add>, %131, %cst_59 [1] : vector<5x32xf32> to vector<5xf32>
    %137 = vector.shape_cast %136 : vector<5xf32> to vector<5x1xf32>
    %cst_60 = arith.constant 3.200000e+01 : f32
    %138 = vector.broadcast %cst_60 : f32 to vector<5x1xf32>
    %139 = arith.divf %137, %138 : vector<5x1xf32>
    %140 = vector.broadcast %139 : vector<5x1xf32> to vector<5x32xf32>
    %141 = arith.subf %131, %140 : vector<5x32xf32>
    %142 = arith.mulf %141, %141 : vector<5x32xf32>
    %cst_61 = arith.constant dense<0.000000e+00> : vector<5xf32>
    %143 = vector.multi_reduction <add>, %142, %cst_61 [1] : vector<5x32xf32> to vector<5xf32>
    %144 = vector.shape_cast %143 : vector<5xf32> to vector<5x1xf32>
    %cst_62 = arith.constant 3.200000e+01 : f32
    %145 = vector.broadcast %cst_62 : f32 to vector<5x1xf32>
    %146 = arith.divf %144, %145 : vector<5x1xf32>
    %147 = vector.broadcast %139 : vector<5x1xf32> to vector<5x32xf32>
    %148 = arith.subf %131, %147 : vector<5x32xf32>
    %cst_63 = arith.constant 9.99999974E-6 : f32
    %149 = vector.broadcast %cst_63 : f32 to vector<5x1xf32>
    %150 = arith.addf %146, %149 : vector<5x1xf32>
    %151 = math.rsqrt %150 : vector<5x1xf32>
    %152 = vector.broadcast %151 : vector<5x1xf32> to vector<5x32xf32>
    %153 = arith.mulf %148, %152 : vector<5x32xf32>
    %154 = vector.broadcast %133 : vector<1x32xf32> to vector<5x32xf32>
    %155 = arith.mulf %153, %154 : vector<5x32xf32>
    %156 = vector.broadcast %135 : vector<1x32xf32> to vector<5x32xf32>
    %157 = arith.addf %155, %156 : vector<5x32xf32>
    %158 = arith.truncf %157 : vector<5x32xf32> to vector<5x32xbf16>
    %c0_64 = arith.constant 0 : index
    %c0_65 = arith.constant 0 : index
    %c0_66 = arith.constant 0 : index
    %159 = vector.load %arg10[%c0_64, %c0_65, %c0_66] : memref<1x32x64xbf16, #tpu.memory_space<vmem>>, vector<1x32x64xbf16>
    %160 = vector.shape_cast %159 : vector<1x32x64xbf16> to vector<32x64xbf16>
    %cst_67 = arith.constant dense<0.000000e+00> : vector<5x64xf32>
    %161 = tpu.matmul %158, %160, %cst_67 {dimension_numbers = #tpu.dot_dimension_numbers<[1], [0], [0], [1], [0, 0, 1, 1], [], []>} : vector<5x32xbf16>, vector<32x64xbf16>, vector<5x64xf32> -> vector<5x64xf32>
    %c0_68 = arith.constant 0 : index
    %c0_69 = arith.constant 0 : index
    %c0_70 = arith.constant 0 : index
    %162 = vector.load %arg11[%c0_68, %c0_69, %c0_70] : memref<1x1x64xf32, #tpu.memory_space<vmem>>, vector<1x1x64xf32>
    %163 = vector.shape_cast %162 : vector<1x1x64xf32> to vector<1x64xf32>
    %164 = vector.broadcast %163 : vector<1x64xf32> to vector<5x64xf32>
    %165 = arith.addf %161, %164 : vector<5x64xf32>
    %cst_71 = arith.constant 5.000000e-01 : f32
    %166 = vector.broadcast %cst_71 : f32 to vector<5x64xf32>
    %167 = arith.mulf %166, %165 : vector<5x64xf32>
    %cst_72 = arith.constant 4.471500e-02 : f32
    %168 = vector.broadcast %cst_72 : f32 to vector<5x64xf32>
    %169 = arith.mulf %168, %165 : vector<5x64xf32>
    %170 = arith.mulf %169, %165 : vector<5x64xf32>
    %171 = arith.mulf %170, %165 : vector<5x64xf32>
    %172 = arith.addf %165, %171 : vector<5x64xf32>
    %cst_73 = arith.constant 0.797884583 : f32
    %173 = vector.broadcast %cst_73 : f32 to vector<5x64xf32>
    %174 = arith.mulf %173, %172 : vector<5x64xf32>
    %175 = math.tanh %174 : vector<5x64xf32>
    %cst_74 = arith.constant 1.000000e+00 : f32
    %176 = vector.broadcast %cst_74 : f32 to vector<5x64xf32>
    %177 = arith.addf %176, %175 : vector<5x64xf32>
    %178 = arith.mulf %167, %177 : vector<5x64xf32>
    %179 = arith.truncf %178 : vector<5x64xf32> to vector<5x64xbf16>
    %c0_75 = arith.constant 0 : index
    %c0_76 = arith.constant 0 : index
    %c0_77 = arith.constant 0 : index
    %180 = vector.load %arg12[%c0_75, %c0_76, %c0_77] : memref<1x64x32xbf16, #tpu.memory_space<vmem>>, vector<1x64x32xbf16>
    %181 = vector.shape_cast %180 : vector<1x64x32xbf16> to vector<64x32xbf16>
    %cst_78 = arith.constant dense<0.000000e+00> : vector<5x32xf32>
    %182 = tpu.matmul %179, %181, %cst_78 {dimension_numbers = #tpu.dot_dimension_numbers<[1], [0], [0], [1], [0, 0, 1, 1], [], []>} : vector<5x64xbf16>, vector<64x32xbf16>, vector<5x32xf32> -> vector<5x32xf32>
    %c0_79 = arith.constant 0 : index
    %c0_80 = arith.constant 0 : index
    %c0_81 = arith.constant 0 : index
    %183 = vector.load %arg13[%c0_79, %c0_80, %c0_81] : memref<1x1x32xf32, #tpu.memory_space<vmem>>, vector<1x1x32xf32>
    %184 = vector.shape_cast %183 : vector<1x1x32xf32> to vector<1x32xf32>
    %185 = vector.broadcast %184 : vector<1x32xf32> to vector<5x32xf32>
    %186 = arith.addf %182, %185 : vector<5x32xf32>
    %187 = arith.addf %131, %186 : vector<5x32xf32>
    %c0_82 = arith.constant 0 : index
    %c0_83 = arith.constant 0 : index
    %188 = vector.load %arg15[%c0_82, %c0_83] : memref<5x32xf32, #tpu.memory_space<vmem>>, vector<5x32xf32>
    tpu.vector_store %arg15[%c0_82, %c0_83], %187 {strides = array<i32>} : memref<5x32xf32, #tpu.memory_space<vmem>>, vector<5x32xf32>,
    %c1_i32 = arith.constant 1 : i32
    %189 = arith.cmpi eq, %arg1, %c1_i32 : i32
    %190 = arith.extui %189 : i1 to i32
    %c0_i32_84 = arith.constant 0 : i32
    %191 = arith.cmpi ne, %190, %c0_i32_84 : i32
    scf.if %191 {
      %c0_85 = arith.constant 0 : index
      %c0_86 = arith.constant 0 : index
      %192 = vector.load %arg15[%c0_85, %c0_86] : memref<5x32xf32, #tpu.memory_space<vmem>>, vector<5x32xf32>
      %c0_87 = arith.constant 0 : index
      %c0_88 = arith.constant 0 : index
      %c0_89 = arith.constant 0 : index
      %193 = vector.load %arg14[%c0_87, %c0_88, %c0_89] : memref<1x5x32xf32, #tpu.memory_space<vmem>>, vector<1x5x32xf32>
      %194 = vector.shape_cast %193 : vector<1x5x32xf32> to vector<5x32xf32>
      %195 = vector.shape_cast %192 : vector<5x32xf32> to vector<1x5x32xf32>
      tpu.vector_store %arg14[%c0_87, %c0_88, %c0_89], %195 {strides = array<i32>} : memref<1x5x32xf32, #tpu.memory_space<vmem>>, vector<1x5x32xf32>,
    } else {
    }
    return
  }
  func.func @transform_0(%arg0: i32, %arg1: i32) -> (i32, i32, i32) {
    %c0_i32 = arith.constant 0 : i32
    %c0_i32_0 = arith.constant 0 : i32
    %c0_i32_1 = arith.constant 0 : i32
    return %arg0, %c0_i32, %c0_i32_0 : i32, i32, i32
  }
  func.func @transform_1(%arg0: i32, %arg1: i32) -> (i32, i32, i32) {
    %c0_i32 = arith.constant 0 : i32
    %c0_i32_0 = arith.constant 0 : i32
    %c0_i32_1 = arith.constant 0 : i32
    return %arg1, %c0_i32, %c0_i32_0 : i32, i32, i32
  }
  func.func @transform_2(%arg0: i32, %arg1: i32) -> (i32, i32, i32) {
    %c0_i32 = arith.constant 0 : i32
    %c0_i32_0 = arith.constant 0 : i32
    %c0_i32_1 = arith.constant 0 : i32
    return %arg1, %c0_i32, %c0_i32_0 : i32, i32, i32
  }
  func.func @transform_3(%arg0: i32, %arg1: i32) -> (i32, i32, i32) {
    %c0_i32 = arith.constant 0 : i32
    %c0_i32_0 = arith.constant 0 : i32
    %c0_i32_1 = arith.constant 0 : i32
    return %arg1, %c0_i32, %c0_i32_0 : i32, i32, i32
  }
  func.func @transform_4(%arg0: i32, %arg1: i32) -> (i32, i32, i32, i32) {
    %c0_i32 = arith.constant 0 : i32
    %c0_i32_0 = arith.constant 0 : i32
    %c0_i32_1 = arith.constant 0 : i32
    %c0_i32_2 = arith.constant 0 : i32
    return %arg1, %c0_i32, %c0_i32_0, %c0_i32_1 : i32, i32, i32, i32
  }
  func.func @transform_5(%arg0: i32, %arg1: i32) -> (i32, i32, i32) {
    %c0_i32 = arith.constant 0 : i32
    %c0_i32_0 = arith.constant 0 : i32
    %c0_i32_1 = arith.constant 0 : i32
    return %arg1, %c0_i32, %c0_i32_0 : i32, i32, i32
  }
  func.func @transform_6(%arg0: i32, %arg1: i32) -> (i32, i32, i32) {
    %c0_i32 = arith.constant 0 : i32
    %c0_i32_0 = arith.constant 0 : i32
    %c0_i32_1 = arith.constant 0 : i32
    return %arg1, %c0_i32, %c0_i32_0 : i32, i32, i32
  }
  func.func @transform_7(%arg0: i32, %arg1: i32) -> (i32, i32, i32) {
    %c0_i32 = arith.constant 0 : i32
    %c0_i32_0 = arith.constant 0 : i32
    %c0_i32_1 = arith.constant 0 : i32
    return %arg1, %c0_i32, %c0_i32_0 : i32, i32, i32
  }
  func.func @transform_8(%arg0: i32, %arg1: i32) -> (i32, i32, i32) {
    %c0_i32 = arith.constant 0 : i32
    %c0_i32_0 = arith.constant 0 : i32
    %c0_i32_1 = arith.constant 0 : i32
    return %arg1, %c0_i32, %c0_i32_0 : i32, i32, i32
  }
  func.func @transform_9(%arg0: i32, %arg1: i32) -> (i32, i32, i32) {
    %c0_i32 = arith.constant 0 : i32
    %c0_i32_0 = arith.constant 0 : i32
    %c0_i32_1 = arith.constant 0 : i32
    return %arg1, %c0_i32, %c0_i32_0 : i32, i32, i32
  }
  func.func @transform_10(%arg0: i32, %arg1: i32) -> (i32, i32, i32) {
    %c0_i32 = arith.constant 0 : i32
    %c0_i32_0 = arith.constant 0 : i32
    %c0_i32_1 = arith.constant 0 : i32
    return %arg1, %c0_i32, %c0_i32_0 : i32, i32, i32
  }
  func.func @transform_11(%arg0: i32, %arg1: i32) -> (i32, i32, i32) {
    %c0_i32 = arith.constant 0 : i32
    %c0_i32_0 = arith.constant 0 : i32
    %c0_i32_1 = arith.constant 0 : i32
    return %arg1, %c0_i32, %c0_i32_0 : i32, i32, i32
  }
  func.func @transform_12(%arg0: i32, %arg1: i32) -> (i32, i32, i32) {
    %c0_i32 = arith.constant 0 : i32
    %c0_i32_0 = arith.constant 0 : i32
    %c0_i32_1 = arith.constant 0 : i32
    return %arg0, %c0_i32, %c0_i32_0 : i32, i32, i32
  }
}

</mosaic_0001>

<bundles_post_ra>
// kernel: nkat_vit_forward.5
= control target key start
LH: loop header
LB: loop body
LE: loop exit
PB: predicated region body
PF: predicated region fallthrough
CT: control target
= control target key end

     0   :  { %vm118_vm0 = vcmask 1044480   ;;  %vm119_vm1 = vcmask 1045504   ;;  %vm93_vm2 = vcmask 220160   ;;  %v482_v1 = vmov 65535   ;;  %s706_s1 = inlined_call_operand.vmem [shape: bf16[27,128], index: 1, kind: input, shape index: {}]   ;;  %s707_s0 = inlined_call_operand.vmem [shape: bf16[128,27], index: 0, kind: input, shape index: {}]   ;;  %s708_s2 = inlined_call_operand.vmem [shape: f32[1,128], index: 2, kind: input, shape index: {}]   ;;  %s709_s3 = inlined_call_operand.vmem [shape: f32[128,128], index: 3, kind: output, shape index: {}]  }
   0x1   :  { %v440_v0 = vld [vmem:[%s706_s1] sm:$0xff]   ;;  %v120_v2 = vsel %vm118_vm0, 4294967295, %v482_v1  ;;  %v441_v3 = vld [vmem:[%s706_s1 + $0x8] sm:$0x3f]   ;;  %v446_v10 = vld [vmem:[%s707_s0 + $0x10] sm:$0xff]  }
   0x2   :  { %415 = vmatprep.subr.bf16.mxu0 %v440_v0  ;;  %435 = vmatprep.subr.bf16.mxu1 %v440_v0  ;;  %v121_v4 = vsel %vm119_vm1, %v120_v2, 0  ;;  %v442_v5 = vld [vmem:[%s707_s0] sm:$0xff]   ;;  %v444_v8 = vld [vmem:[%s707_s0 + $0x8] sm:$0xff]   ;;  %v447_v11 = vld [vmem:[%s707_s0 + $0x30] sm:$0xff]  }
   0x3   :  { %416 = vmatpush3.bf16.msra.mxu0 %v440_v0  ;;  %437 = vmatpush3.bf16.msra.mxu1 %v440_v0  ;;  %v123_v6 = vand.u32 %v441_v3, %v121_v4  ;;  %v443_v7 = vld [vmem:[%s707_s0 + $0x20] sm:$0xff]   ;;  %v445_v9 = vld [vmem:[%s707_s0 + $0x28] sm:$0xff]   ;;  %v448_v12 = vld [vmem:[%s707_s0 + $0x18] sm:$0xff]  }
   0x4   :  { %419 = vmatprep.mubr.msk.bf16.mxu0 %vm93_vm2, %v442_v5  ;;  %427 = vmatprep.mubr.msk.bf16.mxu1 %vm93_vm2, %v443_v7  ;;  %v449_v13 = vld [vmem:[%s707_s0 + $0x38] sm:$0xff]   ;;  %v544_v14 = vld [vmem:[%s708_s2] ss:$0 sm:$0xff] }
   0x5   :  { %417 = vmatprep.subr.bf16.mxu0 %v123_v6  ;;  %436 = vmatprep.subr.bf16.mxu1 %v123_v6 }
   0x7   :  { %418 = vmatpush3.bf16.msra.mxu0 %v123_v6  ;;  %438 = vmatpush3.bf16.msra.mxu1 %v123_v6 }
   0xa   :  { %420 = vmatmul.mubr.msk.bf16.vlgmr.msra.gmra.mrb[0].mxu0 %vm93_vm2, %v444_v8  ;;  %428 = vmatmul.mubr.msk.bf16.vlgmr.msra.gmra.mrb[0].mxu1 %vm93_vm2, %v445_v9 }
   0xb   :  { %423 = vmatprep.mubr.msk.bf16.mxu0 %vm93_vm2, %v446_v10  ;;  %431 = vmatprep.mubr.msk.bf16.mxu1 %vm93_vm2, %v447_v11 }
  0x12   :  { %424 = vmatmul.mubr.msk.bf16.gmra.mrb[4].mxu0 %vm93_vm2, %v448_v12  ;;  %432 = vmatmul.mubr.msk.bf16.gmra.mrb[4].mxu1 %vm93_vm2, %v449_v13 }
  0xdd   :  { %v421_v15 = vpop.f32.mrb[0].mxu0  ;;  %v429_v16 = vpop.f32.mrb[0].mxu1 }
  0xde   :  { %v168_v17 = vadd.f32 %v421_v15, %v544_v14  ;;  %v200_v18 = vadd.f32 %v429_v16, %v544_v14  ;;  %v159_v19 = vpop.f32.mrb[1].mxu0  ;;  %v191_v20 = vpop.f32.mrb[1].mxu1 }
  0xdf   :  { %v160_v21 = vadd.f32 %v544_v14, %v159_v19  ;;  %v550_v22 = vadd.f32 %v544_v14, %v191_v20  ;;  %v422_v23 = vpop.f32.mrb[2].mxu0  ;;  %v430_v24 = vpop.f32.mrb[2].mxu1 }
  0xe0   :  { %v240_v25 = vmul.f32 0.044715, %v168_v17  ;;  %v248_v26 = vmul.f32 0.044715, %v200_v18  ;;  %v554_v31 = vadd.f32 %v422_v23, %v544_v14  ;;  %v557_v32 = vadd.f32 %v430_v24, %v544_v14  ;;  %v162_v33 = vpop.f32.mrb[3].mxu0  ;;  %v194_v34 = vpop.f32.mrb[3].mxu1 }
  0xe1   :  { %v238_v27 = vmul.f32 0.044715, %v160_v21  ;;  %v246_v28 = vmul.f32 0.044715, %v550_v22  ;;  %v561_v37 = vadd.f32 %v544_v14, %v162_v33  ;;  %v568_v49 = vadd.f32 %v544_v14, %v194_v34 }
  0xe2   :  { %v256_v29 = vmul.f32 %v240_v25, %v168_v17  ;;  %v264_v30 = vmul.f32 %v248_v26, %v200_v18  ;;  %v241_v40 = vmul.f32 0.044715, %v554_v31  ;;  %v249_v43 = vmul.f32 0.044715, %v557_v32 }
  0xe3   :  { %v254_v35 = vmul.f32 %v238_v27, %v160_v21  ;;  %v262_v36 = vmul.f32 %v246_v28, %v550_v22  ;;  %v239_v55 = vmul.f32 0.044715, %v561_v37  ;;  %v575_v58 = vmul.f32 0.5, %v168_v17 }
  0xe4   :  { %v272_v38 = vmul.f32 %v256_v29, %v168_v17  ;;  %v280_v39 = vmul.f32 %v264_v30, %v200_v18  ;;  %v257_v48 = vmul.f32 %v241_v40, %v554_v31  ;;  %v265_v54 = vmul.f32 %v249_v43, %v557_v32 }
  0xe5   :  { %v270_v41 = vmul.f32 %v254_v35, %v160_v21  ;;  %v278_v42 = vmul.f32 %v262_v36, %v550_v22  ;;  %v425_v44 = vpop.f32.mrb[4].mxu0  ;;  %v433_v45 = vpop.f32.mrb[4].mxu1  ;;  %v255_v2 = vmul.f32 %v239_v55, %v561_v37  ;;  %v247_v5 = vmul.f32 0.044715, %v568_v49 }
  0xe6   :  { %v288_v46 = vadd.f32 %v272_v38, %v168_v17  ;;  %v296_v47 = vadd.f32 %v280_v39, %v200_v18  ;;  %v175_v50 = vpop.f32.mrb[5].mxu0  ;;  %v207_v51 = vpop.f32.mrb[5].mxu1  ;;  %v273_v61 = vmul.f32 %v257_v48, %v554_v31  ;;  %v281_v1 = vmul.f32 %v265_v54, %v557_v32 }
  0xe7   :  { %v286_v52 = vadd.f32 %v270_v41, %v160_v21  ;;  %v294_v53 = vadd.f32 %v278_v42, %v550_v22  ;;  %v426_v56 = vpop.f32.mrb[6].mxu0  ;;  %v573_v57 = vpop.f32.mrb[6].mxu1  ;;  %v587_v6 = vadd.f32 %v425_v44, %v544_v14  ;;  %v271_v8 = vmul.f32 %v255_v2, %v561_v37 }
  0xe8   :  { %v304_v59 = vmul.f32 0.7978846, %v288_v46  ;;  %v312_v60 = vmul.f32 0.7978846, %v296_v47  ;;  %v578_v62 = vpop.f32.mrb[7].mxu0  ;;  %v582_v3 = vpop.f32.mrb[7].mxu1  ;;  %v289_v4 = vadd.f32 %v273_v61, %v554_v31  ;;  %v297_v7 = vadd.f32 %v281_v1, %v557_v32 }
  0xe9   :  { %v302_v63 = vmul.f32 0.7978846, %v286_v52  ;;  %v310_v0 = vmul.f32 0.7978846, %v294_v53  ;;  %v592_v9 = vadd.f32 %v433_v45, %v544_v14  ;;  %v232_v10 = vmul.f32 0.5, %v200_v18 }
  0xea   :  { %450 = vtanh.f32 %v304_v59  ;;  %v305_v11 = vmul.f32 0.7978846, %v289_v4  ;;  %v263_v12 = vmul.f32 %v247_v5, %v568_v49  ;;  %v313_v13 = vmul.f32 0.7978846, %v297_v7 }
  0xeb   :  { %452 = vtanh.f32 %v312_v60  ;;  %v287_v15 = vadd.f32 %v271_v8, %v561_v37  ;;  %v244_v16 = vmul.f32 0.044715, %v587_v6  ;;  %v222_v17 = vmul.f32 0.5, %v160_v21 }
  0xec   :  { %454 = vtanh.f32 %v302_v63  ;;  %v279_v19 = vmul.f32 %v263_v12, %v568_v49  ;;  %v252_v20 = vmul.f32 0.044715, %v592_v9  ;;  %v601_v24 = vadd.f32 %v544_v14, %v175_v50 }
  0xed   :  { %456 = vtanh.f32 %v310_v0  ;;  %v303_v23 = vmul.f32 0.7978846, %v287_v15  ;;  %v260_v18 = vmul.f32 %v244_v16, %v587_v6  ;;  %v606_v27 = vadd.f32 %v544_v14, %v207_v51 }
  0xee   :  { %458 = vtanh.f32 %v305_v11  ;;  %v295_v25 = vadd.f32 %v279_v19, %v568_v49  ;;  %v268_v26 = vmul.f32 %v252_v20, %v592_v9  ;;  %v609_v21 = vadd.f32 %v426_v56, %v544_v14 }
  0xef   :  { %460 = vtanh.f32 %v313_v13  ;;  %v230_v28 = vmul.f32 0.5, %v550_v22  ;;  %v276_v29 = vmul.f32 %v260_v18, %v587_v6  ;;  %v242_v30 = vmul.f32 0.044715, %v601_v24 }
  0xf0   :  { %462 = vtanh.f32 %v303_v23  ;;  %v225_v33 = vmul.f32 0.5, %v554_v31  ;;  %v311_v34 = vmul.f32 0.7978846, %v295_v25  ;;  %v284_v35 = vmul.f32 %v268_v26, %v592_v9 }
  0xf1   :  { %v250_v36 = vmul.f32 0.044715, %v606_v27  ;;  %v233_v38 = vmul.f32 0.5, %v557_v32  ;;  %v292_v39 = vadd.f32 %v276_v29, %v587_v6  ;;  %v258_v40 = vmul.f32 %v242_v30, %v601_v24 }
  0xf2   :  { %v245_v22 = vmul.f32 0.044715, %v609_v21  ;;  %v223_v42 = vmul.f32 0.5, %v561_v37  ;;  %464 = vtanh.f32 %v311_v34  ;;  %v300_v43 = vadd.f32 %v284_v35, %v592_v9 }
  0xf3   :  { %v266_v31 = vmul.f32 %v250_v36, %v606_v27  ;;  %v308_v46 = vmul.f32 0.7978846, %v292_v39  ;;  %v274_v47 = vmul.f32 %v258_v40, %v601_v24  ;;  %v629_v37 = vadd.f32 %v573_v57, %v544_v14 }
  0xf4   :  { %v451_v41 = vpop.eup %450  ;;  %v261_v32 = vmul.f32 %v245_v22, %v609_v21  ;;  %v316_v51 = vmul.f32 0.7978846, %v300_v43  ;;  %v648_v13 = vadd.f32 %v544_v14, %v578_v62  ;;  %v211_v62 = vadd.f32 %v544_v14, %v582_v3 }
  0xf5   :  { %v453_v44 = vpop.eup %452  ;;  %v336_v45 = vadd.f32 1.0, %v451_v41  ;;  %v282_v52 = vmul.f32 %v266_v31, %v606_v27  ;;  %466 = vtanh.f32 %v308_v46  ;;  %v290_v56 = vadd.f32 %v274_v47, %v601_v24 }
  0xf6   :  { %v455_v48 = vpop.eup %454  ;;  %v344_v50 = vadd.f32 1.0, %v453_v44  ;;  %468 = vtanh.f32 %v316_v51  ;;  %v253_v8 = vmul.f32 0.044715, %v629_v37  ;;  %v243_v20 = vmul.f32 0.044715, %v648_v13 }
  0xf7   :  { %v457_v53 = vpop.eup %456  ;;  %v352_v54 = vmul.f32 %v336_v45, %v575_v58  ;;  %v334_v55 = vadd.f32 1.0, %v455_v48  ;;  %v298_v63 = vadd.f32 %v282_v52, %v606_v27  ;;  %v306_v2 = vmul.f32 0.7978846, %v290_v56 }
  0xf8   :  { %v459_v59 = vpop.eup %458  ;;  %v360_v60 = vmul.f32 %v344_v50, %v232_v10  ;;  %v342_v61 = vadd.f32 1.0, %v457_v53  ;;  %v277_v58 = vmul.f32 %v261_v32, %v609_v21  ;;  %v231_v26 = vmul.f32 0.5, %v568_v49 }
  0xf9   :  { %v461_v0 = vpop.eup %460  ;;  %368 = vst [vmem:[%s709_s3 + $0x10] sm:$0xff] %v352_v54  ;;  %v350_v57 = vmul.f32 %v334_v55, %v222_v17  ;;  %v337_v1 = vadd.f32 1.0, %v459_v59  ;;  %v314_v7 = vmul.f32 0.7978846, %v298_v63  ;;  %470 = vtanh.f32 %v306_v2 }
  0xfa   :  { %376 = vst [vmem:[%s709_s3 + $0x50] sm:$0xff] %v360_v60  ;;  %v358_v4 = vmul.f32 %v342_v61, %v230_v28  ;;  %v345_v5 = vadd.f32 1.0, %v461_v0  ;;  %v463_v10 = vpop.eup %462  ;;  %v293_v12 = vadd.f32 %v277_v58, %v609_v21  ;;  %v269_v17 = vmul.f32 %v253_v8, %v629_v37 }
  0xfb   :  { %366 = vst [vmem:[%s709_s3] sm:$0xff] %v350_v57  ;;  %v353_v11 = vmul.f32 %v337_v1, %v225_v33  ;;  %v335_v16 = vadd.f32 1.0, %v463_v10  ;;  %472 = vtanh.f32 %v314_v7  ;;  %v259_v29 = vmul.f32 %v243_v20, %v648_v13 }
  0xfc   :  { %374 = vst [vmem:[%s709_s3 + $0x40] sm:$0xff] %v358_v4  ;;  %v361_v15 = vmul.f32 %v345_v5, %v233_v38  ;;  %v309_v19 = vmul.f32 0.7978846, %v293_v12  ;;  %v465_v23 = vpop.eup %464  ;;  %v285_v25 = vmul.f32 %v269_v17, %v629_v37  ;;  %v251_v3 = vmul.f32 0.044715, %v211_v62 }
  0xfd   :  { %369 = vst [vmem:[%s709_s3 + $0x18] sm:$0xff] %v353_v11  ;;  %v351_v18 = vmul.f32 %v335_v16, %v223_v42  ;;  %v343_v28 = vadd.f32 1.0, %v465_v23  ;;  %v275_v34 = vmul.f32 %v259_v29, %v648_v13  ;;  %v228_v36 = vmul.f32 0.5, %v587_v6 }
  0xfe   :  { %377 = vst [vmem:[%s709_s3 + $0x58] sm:$0xff] %v361_v15  ;;  %474 = vtanh.f32 %v309_v19  ;;  %v301_v14 = vadd.f32 %v285_v25, %v629_v37  ;;  %v267_v39 = vmul.f32 %v251_v3, %v211_v62  ;;  %v236_v40 = vmul.f32 0.5, %v592_v9 }
  0xff   :  { %367 = vst [vmem:[%s709_s3 + $0x8] sm:$0xff] %v351_v18  ;;  %v467_v30 = vpop.eup %466  ;;  %v359_v33 = vmul.f32 %v343_v28, %v231_v26  ;;  %v291_v41 = vadd.f32 %v275_v34, %v648_v13  ;;  %v226_v6 = vmul.f32 0.5, %v601_v24  ;;  %v234_v9 = vmul.f32 0.5, %v606_v27 }
 0x100   :  { %v469_v35 = vpop.eup %468  ;;  %v340_v38 = vadd.f32 1.0, %v467_v30  ;;  %v317_v49 = vmul.f32 0.7978846, %v301_v14  ;;  %v283_v43 = vmul.f32 %v267_v39, %v211_v62  ;;  %v229_v24 = vmul.f32 0.5, %v609_v21 }
 0x101   :  { %375 = vst [vmem:[%s709_s3 + $0x48] sm:$0xff] %v359_v33  ;;  %v348_v22 = vadd.f32 1.0, %v469_v35  ;;  %v307_v45 = vmul.f32 0.7978846, %v291_v41  ;;  %v237_v56 = vmul.f32 0.5, %v629_v37  ;;  %v227_v63 = vmul.f32 0.5, %v648_v13 }
 0x102   :  { %v356_v42 = vmul.f32 %v340_v38, %v228_v36  ;;  %476 = vtanh.f32 %v317_v49  ;;  %v299_v32 = vadd.f32 %v283_v43, %v211_v62  ;;  %v235_v1 = vmul.f32 0.5, %v211_v62 }
 0x103   :  { %v471_v31 = vpop.eup %470  ;;  %v364_v44 = vmul.f32 %v348_v22, %v236_v40  ;;  %478 = vtanh.f32 %v307_v45 }
 0x104   :  { %372 = vst [vmem:[%s709_s3 + $0x30] sm:$0xff] %v356_v42  ;;  %v338_v47 = vadd.f32 1.0, %v471_v31  ;;  %v315_v51 = vmul.f32 0.7978846, %v299_v32 }
 0x105   :  { %v473_v46 = vpop.eup %472  ;;  %380 = vst [vmem:[%s709_s3 + $0x70] sm:$0xff] %v364_v44 }
 0x106   :  { %v346_v48 = vadd.f32 1.0, %v473_v46  ;;  %v354_v50 = vmul.f32 %v338_v47, %v226_v6  ;;  %480 = vtanh.f32 %v315_v51 }
 0x108   :  { %v475_v52 = vpop.eup %474  ;;  %v362_v53 = vmul.f32 %v346_v48, %v234_v9  ;;  %370 = vst [vmem:[%s709_s3 + $0x20] sm:$0xff] %v354_v50 }
 0x109   :  { %v341_v54 = vadd.f32 1.0, %v475_v52 }
 0x10a   :  { %378 = vst [vmem:[%s709_s3 + $0x60] sm:$0xff] %v362_v53 }
 0x10b   :  { %v357_v55 = vmul.f32 %v341_v54, %v229_v24 }
 0x10c   :  { %v477_v27 = vpop.eup %476 }
 0x10d   :  { %373 = vst [vmem:[%s709_s3 + $0x38] sm:$0xff] %v357_v55  ;;  %v349_v59 = vadd.f32 1.0, %v477_v27  ;;  %v479_v60 = vpop.eup %478 }
 0x10e   :  { %v339_v21 = vadd.f32 1.0, %v479_v60 }
 0x10f   :  { %v365_v61 = vmul.f32 %v349_v59, %v237_v56 }
 0x110   :  { %v481_v0 = vpop.eup %480  ;;  %v355_v57 = vmul.f32 %v339_v21, %v227_v63 }
 0x111   :  { %381 = vst [vmem:[%s709_s3 + $0x78] sm:$0xff] %v365_v61  ;;  %v347_v2 = vadd.f32 1.0, %v481_v0 }
 0x112   :  { %371 = vst [vmem:[%s709_s3 + $0x28] sm:$0xff] %v355_v57 }
 0x113   :  { %v363_v58 = vmul.f32 %v347_v2, %v235_v1 }
 0x115   :  { %379 = vst [vmem:[%s709_s3 + $0x68] sm:$0xff] %v363_v58 }

// kernel: nkat_vit_forward.6
= control target key start
LH: loop header
LB: loop body
LE: loop exit
PB: predicated region body
PF: predicated region fallthrough
CT: control target
= control target key end

     0   :  { %vm204_vm0 = vcmask 261120   ;;  %s561_s1 = inlined_call_operand.vmem [shape: bf16[288,128], index: 1, kind: input, shape index: {}]   ;;  %s562_s0 = inlined_call_operand.vmem [shape: bf16[32,288], index: 0, kind: input, shape index: {}]   ;;  %s563_s2 = inlined_call_operand.vmem [shape: f32[1,128], index: 2, kind: input, shape index: {}]   ;;  %s564_s3 = inlined_call_operand.vmem [shape: f32[32,128], index: 3, kind: output, shape index: {}]  }
   0x1   :  { %v420_v0 = vld [vmem:[%s561_s1 + $0x40] sm:$0xff]   ;;  %v422_v2 = vld [vmem:[%s561_s1 + $0x48] sm:$0xff]   ;;  %v424_v4 = vld [vmem:[%s561_s1 + $0x50] sm:$0xff]  }
   0x2   :  { %v421_v1 = vld [vmem:[%s561_s1] sm:$0xff]   ;;  %380 = vmatprep.subr.bf16.mxu0 %v420_v0  ;;  %v423_v3 = vld [vmem:[%s561_s1 + $0x8] sm:$0xff]   ;;  %v425_v5 = vld [vmem:[%s561_s1 + $0x10] sm:$0xff]  }
   0x3   :  { %381 = vmatpush3.bf16.msra.mxu0 %v421_v1  ;;  %v426_v6 = vld [vmem:[%s561_s1 + $0x58] sm:$0xff]   ;;  %v428_v8 = vld [vmem:[%s561_s1 + $0x60] sm:$0xff]   ;;  %v430_v11 = vld [vmem:[%s561_s1 + $0x68] sm:$0xff]  }
   0x4   :  { %382 = vmatprep.subr.bf16.mxu0 %v422_v2  ;;  %v427_v7 = vld [vmem:[%s561_s1 + $0x18] sm:$0xff]   ;;  %v429_v9 = vld [vmem:[%s561_s1 + $0x20] sm:$0xff]   ;;  %v431_v12 = vld [vmem:[%s561_s1 + $0x28] sm:$0xff]  }
   0x5   :  { %v435_v10 = vld [vmem:[%s561_s1 + $0x80] sm:$0xff]   ;;  %v432_v13 = vld [vmem:[%s561_s1 + $0x70] sm:$0xff]   ;;  %v440_v15 = vld [vmem:[%s561_s1 + $0x88] sm:$0xff]  }
   0x6   :  { %412 = vmatprep.subr.bf16.mxu1 %v435_v10  ;;  %v439_v14 = vld [vmem:[%s562_s0 + $0x4] ss:$12 sps:$4 sm:$0xff]   ;;  %v441_v16 = vld [vmem:[%s562_s0 + $0x8] ss:$12 sps:$4 sm:$0xff]   ;;  %v442_v17 = vld [vmem:[%s562_s0 + $0x20] ss:$12 sps:$4 sm:$0xff]  }
   0x7   :  { %383 = vmatpush3.bf16.msra.mxu0 %v423_v3  ;;  %413 = vmatpush3.bf16.msra.mxu1 %v435_v10  ;;  %v433_v18 = vld [vmem:[%s561_s1 + $0x30] sm:$0xff]   ;;  %v434_v19 = vld [vmem:[%s561_s1 + $0x78] sm:$0xff]   ;;  %v437_v21 = vld [vmem:[%s562_s0] ss:$12 sps:$4 sm:$0xff]  }
   0x8   :  { %384 = vmatprep.subr.bf16.mxu0 %v424_v4  ;;  %243 = vmatprep.mubr.bf16.mxu0 %v439_v14  ;;  %v436_v20 = vld [vmem:[%s561_s1 + $0x38] sm:$0xff]   ;;  %v353_v30 = vld [vmem:[%s563_s2] ss:$0 sm:$0xff] }
   0x9   :  { %414 = vmatprep.subr.bf16.mxu1 %v440_v15  ;;  %416 = vmatprep.mubr.msk.bf16.mxu1 %vm204_vm0, %v441_v16  ;;  %v443_v22 = vld [vmem:[%s562_s0 + $0x1c] ss:$12 sps:$4 sm:$0xff]   ;;  %v445_v23 = vld [vmem:[%s562_s0 + $0x18] ss:$12 sps:$4 sm:$0xff]  }
   0xb   :  { %385 = vmatpush3.bf16.msra.mxu0 %v425_v5  ;;  %415 = vmatpush3.bf16.msra.mxu1 %v440_v15 }
   0xc   :  { %386 = vmatprep.subr.bf16.mxu0 %v426_v6 }
   0xe   :  { %417 = vmatmul.mubr.msk.bf16.vlgmr.msra.gmra.mrb[0].mxu1 %vm204_vm0, %v442_v17 }
   0xf   :  { %387 = vmatpush3.bf16.msra.mxu0 %v427_v7 }
  0x10   :  { %388 = vmatprep.subr.bf16.mxu0 %v428_v8 }
  0x13   :  { %389 = vmatpush3.bf16.msra.mxu0 %v429_v9 }
  0x14   :  { %390 = vmatprep.subr.bf16.mxu0 %v430_v11 }
  0x17   :  { %391 = vmatpush3.bf16.msra.mxu0 %v431_v12 }
  0x18   :  { %392 = vmatprep.subr.bf16.mxu0 %v432_v13 }
  0x1b   :  { %393 = vmatpush3.bf16.msra.mxu0 %v433_v18 }
  0x1c   :  { %394 = vmatprep.subr.bf16.mxu0 %v434_v19 }
  0x1f   :  { %395 = vmatpush3.bf16.msra.mxu0 %v436_v20 }
  0x22   :  { %244 = vmatmul.mubr.bf16.vlgmr.msra.gmra.mrb[0].mxu0 %v437_v21 }
  0x23   :  { %251 = vmatprep.mubr.bf16.mxu0 %v443_v22 }
  0x2a   :  { %252 = vmatmul.mubr.bf16.gmra.mrb[4].mxu0 %v445_v23 }
  0xe1   :  { %v418_v24 = vpop.f32.mrb[0].mxu1 }
  0xe2   :  { %v294_v25 = vpop.f32.mrb[1].mxu1 }
  0xe3   :  { %v419_v26 = vpop.f32.mrb[2].mxu1 }
  0xe4   :  { %v297_v27 = vpop.f32.mrb[3].mxu1 }
  0xf5   :  { %v396_v28 = vpop.f32.mrb[0].mxu0 }
  0xf6   :  { %v397_v29 = vpop.f32.mrb[1].mxu0 }
  0xf7   :  { %v398_v31 = vadd.f32 %v397_v29, %v396_v28  ;;  %v399_v32 = vpop.f32.mrb[2].mxu0 }
  0xf8   :  { %v400_v33 = vpop.f32.mrb[3].mxu0 }
  0xf9   :  { %v401_v34 = vadd.f32 %v400_v33, %v399_v32  ;;  %v246_v35 = vadd.f32 %v398_v31, %v353_v30 }
  0xfb   :  { %v295_v36 = vadd.f32 %v294_v25, %v246_v35  ;;  %v249_v37 = vadd.f32 %v401_v34, %v353_v30 }
  0xfd   :  { %v313_v38 = vmul.f32 0.044715, %v295_v36  ;;  %v298_v39 = vadd.f32 %v297_v27, %v249_v37  ;;  %v402_v40 = vpop.f32.mrb[4].mxu0  ;;  %v309_v6 = vmul.f32 0.5, %v295_v36 }
  0xfe   :  { %v403_v41 = vpop.f32.mrb[5].mxu0 }
  0xff   :  { %v317_v42 = vmul.f32 %v313_v38, %v295_v36  ;;  %v314_v43 = vmul.f32 0.044715, %v298_v39  ;;  %v404_v44 = vadd.f32 %v403_v41, %v402_v40  ;;  %v405_v45 = vpop.f32.mrb[6].mxu0  ;;  %v310_v10 = vmul.f32 0.5, %v298_v39 }
 0x100   :  { %v406_v46 = vpop.f32.mrb[7].mxu0 }
 0x101   :  { %v321_v47 = vmul.f32 %v317_v42, %v295_v36  ;;  %v318_v48 = vmul.f32 %v314_v43, %v298_v39  ;;  %v254_v49 = vadd.f32 %v404_v44, %v353_v30  ;;  %v407_v50 = vadd.f32 %v406_v46, %v405_v45 }
 0x103   :  { %v325_v51 = vadd.f32 %v321_v47, %v295_v36  ;;  %v322_v52 = vmul.f32 %v318_v48, %v298_v39  ;;  %v303_v53 = vadd.f32 %v418_v24, %v254_v49  ;;  %v257_v54 = vadd.f32 %v407_v50, %v353_v30 }
 0x105   :  { %v329_v55 = vmul.f32 0.7978846, %v325_v51  ;;  %v326_v56 = vadd.f32 %v322_v52, %v298_v39  ;;  %v315_v57 = vmul.f32 0.044715, %v303_v53  ;;  %v306_v58 = vadd.f32 %v419_v26, %v257_v54 }
 0x106   :  { %v311_v14 = vmul.f32 0.5, %v303_v53 }
 0x107   :  { %446 = vtanh.f32 %v329_v55  ;;  %v330_v59 = vmul.f32 0.7978846, %v326_v56  ;;  %v319_v60 = vmul.f32 %v315_v57, %v303_v53  ;;  %v316_v61 = vmul.f32 0.044715, %v306_v58 }
 0x108   :  { %v312_v18 = vmul.f32 0.5, %v306_v58 }
 0x109   :  { %448 = vtanh.f32 %v330_v59  ;;  %v323_v62 = vmul.f32 %v319_v60, %v303_v53  ;;  %v320_v63 = vmul.f32 %v316_v61, %v306_v58 }
 0x10b   :  { %v327_v0 = vadd.f32 %v323_v62, %v303_v53  ;;  %v324_v1 = vmul.f32 %v320_v63, %v306_v58 }
 0x10d   :  { %v331_v2 = vmul.f32 0.7978846, %v327_v0  ;;  %v328_v3 = vadd.f32 %v324_v1, %v306_v58 }
 0x10f   :  { %450 = vtanh.f32 %v331_v2  ;;  %v332_v4 = vmul.f32 0.7978846, %v328_v3 }
 0x111   :  { %v447_v5 = vpop.eup %446  ;;  %452 = vtanh.f32 %v332_v4 }
 0x112   :  { %v337_v7 = vadd.f32 1.0, %v447_v5 }
 0x113   :  { %v449_v8 = vpop.eup %448 }
 0x114   :  { %v341_v9 = vmul.f32 %v337_v7, %v309_v6  ;;  %v338_v11 = vadd.f32 1.0, %v449_v8 }
 0x116   :  { %345 = vst [vmem:[%s564_s3] sm:$0xff] %v341_v9  ;;  %v342_v12 = vmul.f32 %v338_v11, %v310_v10 }
 0x118   :  { %346 = vst [vmem:[%s564_s3 + $0x8] sm:$0xff] %v342_v12 }
 0x119   :  { %v451_v13 = vpop.eup %450 }
 0x11a   :  { %v339_v15 = vadd.f32 1.0, %v451_v13 }
 0x11b   :  { %v453_v16 = vpop.eup %452 }
 0x11c   :  { %v343_v17 = vmul.f32 %v339_v15, %v311_v14  ;;  %v340_v19 = vadd.f32 1.0, %v453_v16 }
 0x11e   :  { %347 = vst [vmem:[%s564_s3 + $0x10] sm:$0xff] %v343_v17  ;;  %v344_v20 = vmul.f32 %v340_v19, %v312_v18 }
 0x120   :  { %348 = vst [vmem:[%s564_s3 + $0x18] sm:$0xff] %v344_v20 }

// kernel: nkat_vit_forward.7
= control target key start
LH: loop header
LB: loop body
LE: loop exit
PB: predicated region body
PF: predicated region fallthrough
CT: control target
= control target key end

     0   :  { %s339_s1 = inlined_call_operand.vmem [shape: bf16[256,128], index: 1, kind: input, shape index: {}]   ;;  %s340_s0 = inlined_call_operand.vmem [shape: bf16[8,256], index: 0, kind: input, shape index: {}]   ;;  %s341_s2 = inlined_call_operand.vmem [shape: f32[1,128], index: 2, kind: input, shape index: {}]   ;;  %s342_s3 = inlined_call_operand.vmem [shape: f32[8,128], index: 3, kind: output, shape index: {}]  }
   0x1   :  { %v244_v0 = vld [vmem:[%s339_s1 + $0x40] sm:$0xff]   ;;  %v246_v2 = vld [vmem:[%s339_s1 + $0x48] sm:$0xff]   ;;  %v248_v4 = vld [vmem:[%s339_s1 + $0x50] sm:$0xff]  }
   0x2   :  { %v245_v1 = vld [vmem:[%s339_s1] sm:$0xff]   ;;  %222 = vmatprep.subr.bf16.mxu0 %v244_v0  ;;  %v247_v3 = vld [vmem:[%s339_s1 + $0x8] sm:$0xff]   ;;  %v249_v5 = vld [vmem:[%s339_s1 + $0x10] sm:$0xff]  }
   0x3   :  { %223 = vmatpush3.bf16.msra.mxu0 %v245_v1  ;;  %v250_v6 = vld [vmem:[%s339_s1 + $0x58] sm:$0xff]   ;;  %v252_v8 = vld [vmem:[%s339_s1 + $0x60] sm:$0xff]   ;;  %v254_v10 = vld [vmem:[%s339_s1 + $0x68] sm:$0xff]  }
   0x4   :  { %224 = vmatprep.subr.bf16.mxu0 %v246_v2  ;;  %v251_v7 = vld [vmem:[%s339_s1 + $0x18] sm:$0xff]   ;;  %v253_v9 = vld [vmem:[%s339_s1 + $0x20] sm:$0xff]   ;;  %v255_v13 = vld [vmem:[%s339_s1 + $0x28] sm:$0xff]  }
   0x5   :  { %v15_v11 = vld [vmem:[%s340_s0] sm:$0xff]  ;;  %v256_v14 = vld [vmem:[%s339_s1 + $0x70] sm:$0xff]   ;;  %v258_v16 = vld [vmem:[%s339_s1 + $0x78] sm:$0xff]  }
   0x6   :  { %v205_v12 = vcombine.high %v15_v11, %v15_v11  ;;  %v257_v15 = vld [vmem:[%s339_s1 + $0x30] sm:$0xff]   ;;  %v259_v17 = vld [vmem:[%s339_s1 + $0x38] sm:$0xff]   ;;  %v204_v18 = vcombine.low %v15_v11, %v15_v11  ;;  %v203_v20 = vld [vmem:[%s341_s2] ss:$0 sm:$0xff] }
   0x7   :  { %225 = vmatpush3.bf16.msra.mxu0 %v247_v3 }
   0x8   :  { %226 = vmatprep.subr.bf16.mxu0 %v248_v4  ;;  %190 = vmatprep.mubr.bf16.mxu0 %v205_v12 }
   0xb   :  { %227 = vmatpush3.bf16.msra.mxu0 %v249_v5 }
   0xc   :  { %228 = vmatprep.subr.bf16.mxu0 %v250_v6 }
   0xf   :  { %229 = vmatpush3.bf16.msra.mxu0 %v251_v7 }
  0x10   :  { %230 = vmatprep.subr.bf16.mxu0 %v252_v8 }
  0x13   :  { %231 = vmatpush3.bf16.msra.mxu0 %v253_v9 }
  0x14   :  { %232 = vmatprep.subr.bf16.mxu0 %v254_v10 }
  0x17   :  { %233 = vmatpush3.bf16.msra.mxu0 %v255_v13 }
  0x18   :  { %234 = vmatprep.subr.bf16.mxu0 %v256_v14 }
  0x1b   :  { %235 = vmatpush3.bf16.msra.mxu0 %v257_v15 }
  0x1c   :  { %236 = vmatprep.subr.bf16.mxu0 %v258_v16 }
  0x1f   :  { %237 = vmatpush3.bf16.msra.mxu0 %v259_v17 }
  0x22   :  { %191 = vmatmul.mubr.bf16.vlgmr.msra.gmra.mrb[0].mxu0 %v204_v18 }
  0xf5   :  { %v238_v19 = vpop.f32.mrb[0].mxu0 }
  0xf6   :  { %v239_v21 = vpop.f32.mrb[1].mxu0 }
  0xf7   :  { %v240_v22 = vadd.f32 %v239_v21, %v238_v19  ;;  %v241_v23 = vpop.f32.mrb[2].mxu0 }
  0xf8   :  { %v242_v24 = vpop.f32.mrb[3].mxu0 }
  0xf9   :  { %v193_v25 = vadd.f32 %v240_v22, %v203_v20 }
  0xfb   :  { %198 = vst [vmem:[%s342_s3] sm:$0xff] %v193_v25 }

// kernel: nkat_vit_forward.9
= control target key start
LH: loop header
LB: loop body
LE: loop exit
PB: predicated region body
PF: predicated region fallthrough
CT: control target
= control target key end

     0   :  { %vm28_vm0 = vcmask 261120   ;;  %v237_v8 = vmov 0.0   ;;  %vm238_vm1 = vmmov 0   ;;  %vm151_vm2 = vcmask 130048   ;;  %s309_s0 = inlined_call_operand.vmem [shape: f32[8,32], index: 0, kind: input, shape index: {}]   ;;  %s310_s3 = inlined_call_operand.vmem [shape: bf16[32,16], index: 3, kind: input, shape index: {}]   ;;  %s311_s1 = inlined_call_operand.vmem [shape: f32[1,32], index: 1, kind: input, shape index: {}]   ;;  %s312_s2 = inlined_call_operand.vmem [shape: f32[1,32], index: 2, kind: input, shape index: {}]   ;;  %s313_s5 = inlined_call_operand.vmem [shape: bf16[16,128], index: 5, kind: input, shape index: {}]   ;;  %s314_s4 = inlined_call_operand.vmem [shape: f32[1,16], index: 4, kind: input, shape index: {}]   ;;  %s315_s6 = inlined_call_operand.vmem [shape: f32[1,128], index: 6, kind: input, shape index: {}]   ;;  %s316_s7 = inlined_call_operand.vmem [shape: f32[8,128], index: 7, kind: output, shape index: {}]  }
   0x1   :  { %v27_v0 = vld [vmem:[%s309_s0] sm:$0xff]  ;;  %214 = vmatprep.subr.bf16.mxu0 %v237_v8  ;;  %222 = vmatprep.subr.bf16.mxu1 %v237_v8  ;;  %v231_v9 = vld [vmem:[%s310_s3 + $0x8] sm:$0xff]  }
   0x2   :  { %v29_v1 = vsel %vm28_vm0, %v27_v0, 0.0  ;;  %v230_v7 = vld [vmem:[%s310_s3] sm:$0xff]   ;;  %218 = vmatprep.mubr.msk.bf16.mxu0 %vm238_vm1, %v237_v8  ;;  %224 = vmatprep.mubr.msk.bf16.mxu1 %vm238_vm1, %v237_v8 }
   0x3   :  { %30 = vadd.xlane.f32.xlu0 %v29_v1  ;;  %215 = vmatpush3.bf16.msra.mxu0 %v230_v7  ;;  %v200_v14 = vld [vmem:[%s311_s1] ss:$0 sm:$0xff] }
   0x4   :  { %216 = vmatprep.subr.bf16.mxu0 %v237_v8  ;;  %v201_v16 = vld [vmem:[%s312_s2] ss:$0 sm:$0xff] }
   0x5   :  { %v232_v20 = vld [vmem:[%s313_s5] sm:$0xff]  }
   0x6   :  { %223 = vmatpush3.bf16.msra.mxu1 %v232_v20  ;;  %v202_v21 = vld [vmem:[%s314_s4] ss:$0 sm:$0xff] }
   0x7   :  { %217 = vmatpush3.bf16.msra.mxu0 %v231_v9  ;;  %v206_v37 = vld [vmem:[%s315_s6] ss:$0 sm:$0xff] }
  0x90   :  { %v31_v2 = vpop.xlane.xlu0 %30 }
  0x91   :  { %v33_v3 = vmul.f32 0.03125, %v31_v2 }
  0x93   :  { %v34_v4 = vsub.f32 %v27_v0, %v33_v3 }
  0x95   :  { %v35_v5 = vmul.f32 %v34_v4, %v34_v4 }
  0x97   :  { %v36_v6 = vsel %vm28_vm0, %v35_v5, 0.0 }
  0x98   :  { %37 = vadd.xlane.f32.xlu0 %v36_v6 }
 0x125   :  { %v38_v10 = vpop.xlane.xlu0 %37 }
 0x126   :  { %v39_v11 = vmul.f32 0.03125, %v38_v10 }
 0x128   :  { %v40_v12 = vadd.f32 1e-05, %v39_v11 }
 0x12a   :  { %233 = vrsqrt.f32 %v40_v12 }
 0x134   :  { %v234_v13 = vpop.eup %233 }
 0x135   :  { %v42_v15 = vmul.f32 %v234_v13, %v34_v4 }
 0x137   :  { %v50_v17 = vmul.f32 %v200_v14, %v42_v15 }
 0x139   :  { %v58_v18 = vadd.f32 %v201_v16, %v50_v17 }
 0x13b   :  { %v59_v19 = vpack.c.bf16 %v58_v18, %v58_v18 }
 0x13d   :  { %219 = vmatmul.mubr.msk.bf16.vlgmr.msra.gmra.mrb[0].mxu0 %vm28_vm0, %v59_v19 }
 0x210   :  { %v120_v22 = vpop.f32.mrb[0].mxu0 }
 0x211   :  { %v121_v23 = vadd.f32 %v202_v21, %v120_v22  ;;  %v220_v24 = vpop.f32.mrb[1].mxu0 }
 0x212   :  { %v123_v25 = vpop.f32.mrb[2].mxu0 }
 0x213   :  { %v127_v26 = vmul.f32 0.044715, %v121_v23  ;;  %v221_v27 = vpop.f32.mrb[3].mxu0  ;;  %v126_v33 = vmul.f32 0.5, %v121_v23 }
 0x215   :  { %v128_v28 = vmul.f32 %v127_v26, %v121_v23 }
 0x217   :  { %v129_v29 = vmul.f32 %v128_v28, %v121_v23 }
 0x219   :  { %v130_v30 = vadd.f32 %v129_v29, %v121_v23 }
 0x21b   :  { %v131_v31 = vmul.f32 0.7978846, %v130_v30 }
 0x21d   :  { %235 = vtanh.f32 %v131_v31 }
 0x227   :  { %v236_v32 = vpop.eup %235 }
 0x228   :  { %v133_v34 = vadd.f32 1.0, %v236_v32 }
 0x22a   :  { %v134_v35 = vmul.f32 %v133_v34, %v126_v33 }
 0x22c   :  { %v135_v36 = vpack.c.bf16 %v134_v35, %v134_v35 }
 0x22e   :  { %225 = vmatmul.mubr.msk.bf16.vlgmr.msra.gmra.mrb[0].mxu1 %vm151_vm2, %v135_v36 }
 0x301   :  { %v189_v38 = vpop.f32.mrb[0].mxu1 }
 0x302   :  { %v190_v39 = vadd.f32 %v206_v37, %v189_v38  ;;  %v226_v40 = vpop.f32.mrb[1].mxu1 }
 0x303   :  { %v192_v41 = vpop.f32.mrb[2].mxu1 }
 0x304   :  { %195 = vst [vmem:[%s316_s7] sm:$0xff] %v190_v39  ;;  %v227_v42 = vpop.f32.mrb[3].mxu1 }

// kernel: nkat_vit_forward.8
= control target key start
LH: loop header
LB: loop body
LE: loop exit
PB: predicated region body
PF: predicated region fallthrough
CT: control target
= control target key end

     0   :  { %s2120_s21 = smov 0   ;;  %s2122_s22 = smov 0   ;;  %s2393_s0 = inlined_call_operand.vmem [shape: f32[2,5,32], index: 0, kind: input, shape index: {}]   ;;  %s2394_s1 = inlined_call_operand.vmem [shape: f32[2,1,32], index: 1, kind: input, shape index: {}]   ;;  %s2395_s2 = inlined_call_operand.vmem [shape: f32[2,1,32], index: 2, kind: input, shape index: {}]   ;;  %s2396_s3 = inlined_call_operand.vmem [shape: bf16[2,32,96], index: 3, kind: input, shape index: {}]   ;;  %s2397_s4 = inlined_call_operand.vmem [shape: bf16[2,4,8,32], index: 4, kind: input, shape index: {}]   ;;  %s2398_s5 = inlined_call_operand.vmem [shape: f32[2,1,32], index: 5, kind: input, shape index: {}]   ;;  %s2399_s6 = inlined_call_operand.vmem [shape: f32[2,1,32], index: 6, kind: input, shape index: {}]   ;;  %s2400_s7 = inlined_call_operand.vmem [shape: f32[2,1,32], index: 7, kind: input, shape index: {}]   ;;  %s2401_s8 = inlined_call_operand.vmem [shape: bf16[2,32,64], index: 8, kind: input, shape index: {}]   ;;  %s2402_s9 = inlined_call_operand.vmem [shape: f32[2,1,64], index: 9, kind: input, shape index: {}]   ;;  %s2403_s10 = inlined_call_operand.vmem [shape: bf16[2,64,32], index: 10, kind: input, shape index: {}]   ;;  %s2404_s11 = inlined_call_operand.vmem [shape: f32[2,1,32], index: 11, kind: input, shape index: {}]   ;;  %s2405_s12 = inlined_call_operand.vmem [shape: f32[2,5,32], index: 12, kind: output, shape index: {}]  }
   0x1   :  { %2411 = sst [smem:[#allocation10_spill]] %s2393_s0  ;;  %s2124_s23 = smov 0  }
   0x2   :  { %2412 = sst [smem:[#allocation11_spill]] %s2396_s3  ;;  %s2126_s24 = smov 0  }
   0x3   :  { %2413 = sst [smem:[#allocation12_spill]] %s2397_s4  ;;  %s2128_s25 = smov 0  }
   0x4 LB: > { %2414 = sst [smem:[#allocation3_spill]] %s2023_s21  ;;  %s31_s26 = sadd.s32 1, %s2031_s23  ;;  %s2039_s25 = sphi %s2128_s25, %s22_s25   ;;  %s2035_s24 = sphi %s2126_s24, %s2435_s24   ;;  %s2031_s23 = sphi %s2124_s23, %s2434_s23   ;;  %s2027_s22 = sphi %s2122_s22, %s2433_s22   ;;  %s2023_s21 = sphi %s2120_s21, %s2432_s21  }
   0x5   : > { %2415 = sst [smem:[#allocation4_spill]] %s2031_s23  ;;  %s34_s27 = sadd.s32 1, %s2035_s24 }
   0x6   : > { %2416 = sst [smem:[#allocation5_spill]] %s2035_s24  ;;  %p32_p0 = scmp.ge.s32.totalorder %s31_s26, 2 }
   0x7   : > { %2417 = sst [smem:[#allocation6_spill]] %s2039_s25  ;;  %p1730_p1 = scmp.ge.s32.totalorder %s2039_s25, 1 }
   0x8   : > { %p469_p2 = scmp.lt.s32.totalorder %s2039_s25, 5  ;;  %s2437_s26 = smov (%p32_p0, %s31_s26), 0 }
   0x9   : > { %2418 = sst [smem:[#allocation7_spill]] %s2437_s26  ;;  %s2439_s27 = smov (!%p32_p0, %s34_s27), %s2035_s24 }
   0xa   : > { %p470_p3 = pnand %p1730_p1, %p469_p2  ;;  %p36_p4 = scmp.ge.s32.totalorder %s2439_s27, 2 }
   0xc   : > { %s2441_s27 = smov (%p36_p4, %s2439_s27), 0  ;;  %473 = sbr.rel (%p470_p3) target bundleno = 3734 (0xe96), region = 68 }
   0xd   : > { %2419 = sst [smem:[#allocation8_spill]] %s2441_s27 }
  0x13   : > { %p550_p5 = scmp.lt.s32.totalorder %s2027_s22, 1  ;;  %p554_p6 = scmp.lt.s32.totalorder %s2023_s21, 1 }
  0x14   : > { %s2420_s0 = sld [smem:[#allocation10_spill]]  ;;  %s2421_s3 = sld [smem:[#allocation11_spill]] }
  0x15   : > { %s2443_s22 = smov (!%p550_p5, %s2027_s22), 1  ;;  %s2422_s4 = sld [smem:[#allocation12_spill]] }
  0x16   : > { %s2154_s28 = scalar_select %p554_p6, %s2023_s21, 1 }
  0x17   : > { %s1731_s29 = sshll.u32 %s2443_s22, 3 }
  0x18   : > { %s1778_s27 = sshll.u32 %s2154_s28, 4  ;;  %s575_s18 = scalar_lea.vmem %s2399_s6, %s2154_s28 }
  0x19   : > { %s594_s20 = scalar_lea.vmem %s2404_s11, %s2154_s28  ;;  %s2212_s24 = scalar_lea.vmem %s2405_s12, %s1731_s29 }
  0x1a   : > { %s553_s14 = scalar_lea.vmem %s2420_s0, %s1731_s29  ;;  %s2171_s23 = scalar_lea.vmem %s2421_s3, %s1778_s27 }
  0x1b   : > { %s2176_s21 = scalar_lea.vmem %s2422_s4, %s1778_s27  ;;  %s2193_s3 = scalar_lea.vmem %s2401_s8, %s1778_s27 }
  0x1c   : > { %2423 = sst [smem:[#allocation9_spill]] %s2176_s21  ;;  %s586_s4 = scalar_lea.vmem %s2402_s9, %s2154_s28 }
  0x1d   : > { %s1781_s21 = sshll.u32 %s2154_s28, 5  ;;  %s2424_s27 = sld [smem:[#allocation3_spill]] }
  0x1e   : > { %s2203_s15 = scalar_lea.vmem %s2403_s10, %s1781_s21 }
  0x23   : > { %p1741_p7 = scmp.ne.s32.totalorder %s2424_s27, 0 }
  0x24   : > { %v604_v0 = vld [vmem:[%s553_s14] sm:$0x1f] (!%p1741_p7)  ;;  %vm605_vm0 = vcmask (!%p1741_p7), 258048  }
  0x25   : > { %603 = sbr.rel (%p1741_p7) target bundleno = 44 (0x2c), region = 72  ;;  %606 = vst.msk [vmem:[#allocation2] sm:$0x1f] (!%p1741_p7), %vm605_vm0, %v604_v0 }
  0x2c PF: > { %v2215_v1 = vld [vmem:[#allocation2] sm:$0x1f]  ;;  %vm610_vm1 = vcmask 258048   ;;  %v2041_v9 = vmov 0.0   ;;  %vm2042_vm2 = vmmov 0   ;;  %v1972_v10 = vld [vmem:[%s2171_s23 + $0x8] sm:$0xff]   ;;  %s2425_s29 = scalar_lea.vmem %s2394_s1, %s2154_s28  ;;  %s2426_s26 = scalar_lea.vmem %s2395_s2, %s2154_s28 }
  0x2d   : > { %v611_v2 = vsel %vm610_vm1, %v2215_v1, 0.0  ;;  %v1971_v8 = vld [vmem:[%s2171_s23] sm:$0xff]   ;;  %1817 = vmatprep.subr.bf16.mxu1 %v2041_v9  ;;  %1821 = vmatprep.mubr.msk.bf16.mxu1 %vm2042_vm2, %v2041_v9  ;;  %vm656_vm3 = vcmask 261120   ;;  %s2043_s25 = smov 120   ;;  %s2044_s22 = smov 96   ;;  %vm704_vm4 = vcmask 64512  }
  0x2e   : > { %612 = vadd.xlane.f32.xlu0 %v611_v2  ;;  %1818 = vmatpush3.bf16.msra.mxu1 %v1971_v8  ;;  %v1742_v15 = vld [vmem:[%s2425_s29] ss:$0 sm:$0xff]  ;;  %s2045_s30 = smov 88   ;;  %vm751_vm5 = vcmask 36864   ;;  %s2046_s13 = smov 56   ;;  %vm770_vm6 = vcmask 1041408  }
  0x2f   : > { %1831 = vmatprep.subr.bf16.mxu0 %v2041_v9  ;;  %1819 = vmatprep.subr.bf16.mxu1 %v2041_v9  ;;  %v1743_v17 = vld [vmem:[%s2426_s26] ss:$0 sm:$0xff]  ;;  %s2047_s17 = smov 64   ;;  %s2048_s16 = smov 80   ;;  %vm771_vm7 = vcmask 1042432   ;;  %v2050_v53 = vmov 65535  }
  0x30   : > { %1833 = vmatprep.mubr.msk.bf16.mxu0 %vm2042_vm2, %v2041_v9  ;;  %s2049_s19 = smov 112   ;;  %v772_v54 = vsel %vm770_vm6, 4294967295, %v2050_v53  ;;  %s2427_s27 = sld [smem:[#allocation9_spill]]  ;;  %vm766_vm8 = vcmask 39936   ;;  %vm935_vm9 = vcmask 1043456   ;;  %vm1499_vm10 = vcmask 523264  }
  0x31   : > { %v2268_v56 = vsel %vm771_vm7, %v772_v54, 0  ;;  %s2051_s0 = smov 48   ;;  %s2052_s21 = smov 104  }
  0x32   : > { %1820 = vmatpush3.bf16.msra.mxu1 %v1972_v10  ;;  %s2053_s29 = smov 72   ;;  %s2054_s23 = smov 40  }
  0x33   : > { %1825 = vmatprep.subr.bf16.mxu1 %v2041_v9 }
  0xbb   : > { %v613_v3 = vpop.xlane.xlu0 %612 }
  0xbc   : > { %v615_v4 = vmul.f32 0.03125, %v613_v3  ;;  %v818_v3 = vld [vmem:[%s2427_s27] sm:$0xf] }
  0xbe   : > { %v616_v5 = vsub.f32 %v2215_v1, %v615_v4  ;;  %v983_v4 = vsel %vm935_vm9, %v818_v3, 0 }
  0xc0   : > { %v617_v6 = vmul.f32 %v616_v5, %v616_v5 }
  0xc2   : > { %v618_v7 = vsel %vm610_vm1, %v617_v6, 0.0 }
  0xc3   : > { %619 = vadd.xlane.f32.xlu0 %v618_v7 }
 0x150   : > { %v620_v11 = vpop.xlane.xlu0 %619 }
 0x151   : > { %v621_v12 = vmul.f32 0.03125, %v620_v11 }
 0x153   : > { %v622_v13 = vadd.f32 1e-05, %v621_v12 }
 0x155   : > { %1979 = vrsqrt.f32 %v622_v13 }
 0x15f   : > { %v1980_v14 = vpop.eup %1979 }
 0x160   : > { %v624_v16 = vmul.f32 %v1980_v14, %v616_v5  ;;  %v1751_v5 = vld [vmem:[%s2427_s27 + $0x4] sm:$0xf] }
 0x161   : > { %v937_v6 = vsel %vm935_vm9, %v1751_v5, 0  ;;  %v1760_v5 = vld [vmem:[%s2427_s27 + $0xc] sm:$0xf] }
 0x162   : > { %v631_v18 = vmul.f32 %v1742_v15, %v624_v16 }
 0x164   : > { %v638_v19 = vadd.f32 %v1743_v17, %v631_v18 }
 0x166   : > { %v639_v20 = vpack.c.bf16 %v638_v19, %v638_v19 }
 0x168   : > { %1822 = vmatmul.mubr.msk.bf16.vlgmr.msra.gmra.mrb[0].mxu1 %vm656_vm3, %v639_v20 }
 0x169   : > { %1827 = vmatprep.mubr.msk.bf16.mxu1 %vm2042_vm2, %v2041_v9 }
 0x23b   : > { %v694_v21 = vpop.f32.mrb[0].mxu1 }
 0x23c   : > { %v2244_v22 = vpack.c.bf16 %v694_v21, %v694_v21  ;;  %v1823_v23 = vpop.f32.mrb[1].mxu1 }
 0x23d   : > { %v697_v24 = vpop.f32.mrb[2].mxu1 }
 0x23e   : > { %819 = vrot.lane.b32.xlu0 %v2244_v22, %s2043_s25  ;;  %702 = vrot.lane.b32.xlu1 %v2244_v22, %s2044_s22  ;;  %v1824_v25 = vpop.f32.mrb[3].mxu1  ;;  %s2428_s25 = scalar_lea.vmem %s2398_s5, %s2154_s28 }
 0x242   : > { %821 = vrot.lane.b32.xlu1 %v2244_v22, %s2045_s30 }
 0x2b0   : > { %v703_v26 = vpop.permute.xlu1 %702  ;;  %v820_v30 = vpop.permute.xlu0 %819 }
 0x2b1   : > { %v709_v27 = vsel %vm704_vm4, %v703_v26, 0 }
 0x2b2   : > { %1826 = vmatpush3.bf16.xpose.msra.mxu1 %v709_v27 }
 0x2b3   : > { %1837 = vmatprep.subr.bf16.mxu1 %v2041_v9 }
 0x2b4   : > { %v822_v28 = vpop.permute.xlu1 %821 }
 0x2b5   : > { %v827_v29 = vsel %vm704_vm4, %v822_v28, 0 }
 0x2b9   : > { %1828 = vmatmul.mubr.msk.bf16.vlgmr.msra.gmra.mrb[4].mxu1 %vm704_vm4, %v2244_v22 }
 0x2ba   : > { %1838 = vmatpush3.bf16.xpose.msra.mxu1 %v827_v29  ;;  %1839 = vmatprep.mubr.msk.bf16.mxu1 %vm2042_vm2, %v2041_v9 }
 0x2bb   : > { %1849 = vmatprep.subr.bf16.mxu1 %v2041_v9 }
 0x2c1   : > { %1840 = vmatmul.mubr.msk.bf16.vlgmr.msra.gmra.mrb[8].mxu1 %vm704_vm4, %v820_v30 }
 0x2c2   : > { %1851 = vmatprep.mubr.msk.bf16.mxu1 %vm2042_vm2, %v2041_v9  ;;  %1850 = vmatpush3.bf16.msra.mxu1 %v937_v6  ;;  %v1302_v6 = vsel %vm935_vm9, %v1760_v5, 0  ;;  %v1769_v5 = vld [vmem:[%s594_s20] ss:$0 sm:$0xff] }
 0x2c3   : > { %1861 = vmatprep.subr.bf16.mxu1 %v2041_v9 }
 0x38c   : > { %v745_v31 = vpop.f32.mrb[4].mxu1 }
 0x38d   : > { %v1829_v32 = vpop.f32.mrb[5].mxu1  ;;  %v752_v33 = vsel %vm751_vm5, %v745_v31, -inf }
 0x38e   : > { %753 = vmax.xlane.f32.xlu1 %v752_v33  ;;  %v748_v34 = vpop.f32.mrb[6].mxu1 }
 0x38f   : > { %v1830_v35 = vpop.f32.mrb[7].mxu1 }
 0x394   : > { %v863_v36 = vpop.f32.mrb[8].mxu1 }
 0x395   : > { %v1841_v37 = vpop.f32.mrb[9].mxu1  ;;  %v869_v38 = vsel %vm751_vm5, %v863_v36, -inf }
 0x396   : > { %870 = vmax.xlane.f32.xlu0 %v869_v38  ;;  %v866_v39 = vpop.f32.mrb[10].mxu1 }
 0x397   : > { %v1842_v40 = vpop.f32.mrb[11].mxu1 }
 0x3ac   : > { %881 = vrot.lane.b32.xlu0 %v2244_v22, %s2046_s13 }
 0x41b   : > { %v754_v41 = vpop.xlane.xlu1 %753 }
 0x41c   : > { %v755_v42 = vsub.f32 %v745_v31, %v754_v41 }
 0x41e   : > { %v756_v43 = vmul.f32 1.442695, %v755_v42 }
 0x420   : > { %1981 = vpow2.f32 %v756_v43 }
 0x423   : > { %v871_v44 = vpop.xlane.xlu0 %870 }
 0x424   : > { %v872_v45 = vsub.f32 %v863_v36, %v871_v44 }
 0x426   : > { %v873_v46 = vmul.f32 1.442695, %v872_v45 }
 0x427   : > { %v882_v60 = vpop.permute.xlu0 %881 }
 0x428   : > { %1983 = vpow2.f32 %v873_v46  ;;  %v887_v62 = vand.u32 %v882_v60, %v2268_v56 }
 0x42a   : > { %v1982_v47 = vpop.eup %1981 }
 0x42b   : > { %v758_v48 = vsel %vm751_vm5, %v1982_v47, 0.0 }
 0x42c   : > { %759 = vadd.xlane.f32.xlu1 %v758_v48 }
 0x432   : > { %v1984_v49 = vpop.eup %1983 }
 0x433   : > { %v875_v50 = vsel %vm751_vm5, %v1984_v49, 0.0 }
 0x434   : > { %876 = vadd.xlane.f32.xlu1 %v875_v50  ;;  %v1756_v50 = vld [vmem:[%s2427_s27 + $0x8] sm:$0xf] }
 0x445   : > { %764 = vrot.lane.b32.xlu1 %v2244_v22, %s2047_s17 }
 0x449   : > { %1027 = vrot.lane.b32.xlu1 %v2244_v22, %s2048_s16 }
 0x44d   : > { %1025 = vrot.lane.b32.xlu1 %v2244_v22, %s2049_s19  ;;  %s2430_s19 = sld [smem:[#allocation3_spill]] }
 0x453   : > { %p1775_p8 = scmp.ne.s32.totalorder %s2430_s19, 1 }
 0x4b9   : > { %v760_v51 = vpop.xlane.xlu1 %759 }
 0x4ba   : > { %1985 = vrcp.f32 %v760_v51  ;;  %v1142_v51 = vsel %vm935_vm9, %v1756_v50, 0  ;;  %v1977_v50 = vld [vmem:[%s2203_s15 + $0x10] sm:$0xff]  }
 0x4c1   : > { %v877_v52 = vpop.xlane.xlu1 %876 }
 0x4c2   : > { %1987 = vrcp.f32 %v877_v52 }
 0x4c4   : > { %v1986_v55 = vpop.eup %1985 }
 0x4c5   : > { %v765_v57 = vpop.permute.xlu1 %764  ;;  %v762_v58 = vmul.f32 %v1986_v55, %v1982_v47 }
 0x4c6   : > { %v775_v59 = vand.u32 %v2268_v56, %v765_v57 }
 0x4c7   : > { %v763_v61 = vpack.c.bf16 %v762_v58, %v762_v58 }
 0x4c8   : > { %1832 = vmatpush3.bf16.msra.mxu0 %v775_v59 }
 0x4c9   : > { %1843 = vmatprep.subr.bf16.mxu0 %v2041_v9  ;;  %v1028_v13 = vpop.permute.xlu1 %1027 }
 0x4ca   : > { %v1033_v18 = vsel %vm704_vm4, %v1028_v13, 0 }
 0x4cb   : > { %1834 = vmatmul.mubr.msk.bf16.vlgmr.msra.gmra.mrb[0].mxu0 %vm766_vm8, %v763_v61 }
 0x4cc   : > { %v1988_v63 = vpop.eup %1987  ;;  %1844 = vmatpush3.bf16.msra.mxu0 %v887_v62  ;;  %1845 = vmatprep.mubr.msk.bf16.mxu0 %vm2042_vm2, %v2041_v9 }
 0x4cd   : > { %v879_v0 = vmul.f32 %v1988_v63, %v1984_v49  ;;  %1855 = vmatprep.subr.bf16.mxu0 %v2041_v9  ;;  %v1026_v20 = vpop.permute.xlu1 %1025 }
 0x4cf   : > { %v880_v2 = vpack.c.bf16 %v879_v0, %v879_v0 }
 0x4d3   : > { %1846 = vmatmul.mubr.msk.bf16.vlgmr.msra.gmra.mrb[4].mxu0 %vm766_vm8, %v880_v2 }
 0x4d4   : > { %1857 = vmatprep.mubr.msk.bf16.mxu0 %vm2042_vm2, %v2041_v9  ;;  %1856 = vmatpush3.bf16.msra.mxu0 %v983_v4 }
 0x4d5   : > { %1867 = vmatprep.subr.bf16.mxu0 %v2041_v9 }
 0x59e   : > { %v811_v7 = vpop.f32.mrb[0].mxu0 }
 0x59f   : > { %v817_v8 = vpack.c.bf16 %v811_v7, %v811_v7  ;;  %v1835_v10 = vpop.f32.mrb[1].mxu0 }
 0x5a0   : > { %v814_v11 = vpop.f32.mrb[2].mxu0 }
 0x5a1   : > { %v1836_v12 = vpop.f32.mrb[3].mxu0  ;;  %1858 = vmatmul.mubr.msk.bf16.vlgmr.msra.gmra.mrb[8].mxu0 %vm704_vm4, %v817_v8 }
 0x5a2   : > { %1869 = vmatprep.mubr.msk.bf16.mxu0 %vm2042_vm2, %v2041_v9 }
 0x5a6   : > { %v923_v14 = vpop.f32.mrb[4].mxu0 }
 0x5a7   : > { %v929_v15 = vpack.c.bf16 %v923_v14, %v923_v14  ;;  %v1847_v16 = vpop.f32.mrb[5].mxu0 }
 0x5a8   : > { %v926_v17 = vpop.f32.mrb[6].mxu0 }
 0x5a9   : > { %v1848_v19 = vpop.f32.mrb[7].mxu0  ;;  %1852 = vmatmul.mubr.msk.bf16.vlgmr.msra.gmra.mrb[12].mxu1 %vm704_vm4, %v929_v15 }
 0x5aa   : > { %1862 = vmatpush3.bf16.xpose.msra.mxu1 %v1033_v18  ;;  %1863 = vmatprep.mubr.msk.bf16.mxu1 %vm2042_vm2, %v2041_v9 }
 0x5ab   : > { %1873 = vmatprep.subr.bf16.mxu1 %v2041_v9 }
 0x5b1   : > { %1864 = vmatmul.mubr.msk.bf16.vlgmr.msra.gmra.mrb[16].mxu1 %vm704_vm4, %v1026_v20 }
 0x5b2   : > { %1875 = vmatprep.mubr.msk.bf16.mxu1 %vm2042_vm2, %v2041_v9  ;;  %1874 = vmatpush3.bf16.msra.mxu1 %v1142_v51  ;;  %v1978_v51 = vld [vmem:[%s2203_s15 + $0x18] sm:$0xff]  }
 0x5b3   : > { %1885 = vmatprep.subr.bf16.mxu1 %v2041_v9 }
 0x674   : > { %v1019_v21 = vpop.f32.mrb[8].mxu0 }
 0x675   : > { %v1859_v23 = vpop.f32.mrb[9].mxu0 }
 0x676   : > { %v1022_v24 = vpop.f32.mrb[10].mxu0 }
 0x677   : > { %v1860_v25 = vpop.f32.mrb[11].mxu0 }
 0x67c   : > { %v973_v26 = vpop.f32.mrb[12].mxu1 }
 0x67d   : > { %v2297_v27 = vadd.f32 %v1019_v21, %v973_v26  ;;  %v1853_v28 = vpop.f32.mrb[13].mxu1  ;;  %v1762_v26 = vld [vmem:[%s2428_s25] ss:$0 sm:$0xff] }
 0x67e   : > { %v976_v29 = vpop.f32.mrb[14].mxu1 }
 0x67f   : > { %v1854_v30 = vpop.f32.mrb[15].mxu1 }
 0x684   : > { %v1069_v31 = vpop.f32.mrb[16].mxu1 }
 0x685   : > { %v1865_v32 = vpop.f32.mrb[17].mxu1  ;;  %v1075_v33 = vsel %vm751_vm5, %v1069_v31, -inf }
 0x686   : > { %1076 = vmax.xlane.f32.xlu1 %v1075_v33  ;;  %v1072_v34 = vpop.f32.mrb[18].mxu1 }
 0x687   : > { %v1866_v35 = vpop.f32.mrb[19].mxu1 }
 0x697   : > { %1087 = vrot.lane.b32.xlu1 %v2244_v22, %s2051_s0 }
 0x69b   : > { %1185 = vrot.lane.b32.xlu1 %v2244_v22, %s2052_s21 }
 0x713   : > { %v1077_v36 = vpop.xlane.xlu1 %1076 }
 0x714   : > { %v1078_v37 = vsub.f32 %v1069_v31, %v1077_v36 }
 0x716   : > { %v1079_v38 = vmul.f32 1.442695, %v1078_v37  ;;  %v1973_v37 = vld [vmem:[%s2193_s3] sm:$0xff]  }
 0x717   : > { %v1088_v39 = vpop.permute.xlu1 %1087 }
 0x718   : > { %1989 = vpow2.f32 %v1079_v38  ;;  %v1093_v40 = vand.u32 %v1088_v39, %v2268_v56  ;;  %v1974_v38 = vld [vmem:[%s2193_s3 + $0x8] sm:$0xff]   ;;  %s2429_s3 = scalar_lea.vmem %s2400_s7, %s2154_s28 }
 0x71a   : > { %1868 = vmatpush3.bf16.msra.mxu0 %v1093_v40 }
 0x71b   : > { %1879 = vmatprep.subr.bf16.mxu0 %v2041_v9  ;;  %v1186_v49 = vpop.permute.xlu1 %1185 }
 0x722   : > { %v1990_v41 = vpop.eup %1989 }
 0x723   : > { %v1081_v42 = vsel %vm751_vm5, %v1990_v41, 0.0 }
 0x724   : > { %1082 = vadd.xlane.f32.xlu0 %v1081_v42  ;;  %v1763_v42 = vld [vmem:[%s575_s18] ss:$0 sm:$0xff] }
 0x73a   : > { %1187 = vrot.lane.b32.xlu0 %v2244_v22, %s2053_s29 }
 0x7b1   : > { %v1083_v43 = vpop.xlane.xlu0 %1082 }
 0x7b2   : > { %1991 = vrcp.f32 %v1083_v43 }
 0x7b5   : > { %v1188_v46 = vpop.permute.xlu0 %1187 }
 0x7b6   : > { %v1193_v48 = vsel %vm704_vm4, %v1188_v46, 0 }
 0x7bc   : > { %v1992_v44 = vpop.eup %1991 }
 0x7bd   : > { %v1085_v45 = vmul.f32 %v1992_v44, %v1990_v41  ;;  %v1764_v44 = vld [vmem:[%s2429_s3] ss:$0 sm:$0xff] }
 0x7bf   : > { %v1086_v47 = vpack.c.bf16 %v1085_v45, %v1085_v45 }
 0x7c1   : > { %1870 = vmatmul.mubr.msk.bf16.vlgmr.msra.gmra.mrb[12].mxu0 %vm766_vm8, %v1086_v47 }
 0x7c2   : > { %1880 = vmatpush3.bf16.xpose.msra.mxu0 %v1193_v48  ;;  %1881 = vmatprep.mubr.msk.bf16.mxu0 %vm2042_vm2, %v2041_v9  ;;  %v1975_v48 = vld [vmem:[%s2203_s15] sm:$0xff]  }
 0x7c3   : > { %1891 = vmatprep.subr.bf16.mxu0 %v2041_v9 }
 0x7c9   : > { %1882 = vmatmul.mubr.msk.bf16.vlgmr.msra.gmra.mrb[16].mxu0 %vm704_vm4, %v1186_v49  ;;  %v1976_v49 = vld [vmem:[%s2203_s15 + $0x8] sm:$0xff]  }
 0x7ca   : > { %1893 = vmatprep.mubr.msk.bf16.mxu0 %vm2042_vm2, %v2041_v9  ;;  %1892 = vmatpush3.bf16.msra.mxu0 %v1302_v6 }
 0x7cb   : > { %1905 = vmatprep.subr.bf16.mxu0 %v2041_v9 }
 0x894   : > { %v1129_v52 = vpop.f32.mrb[12].mxu0 }
 0x895   : > { %v1135_v53 = vpack.c.bf16 %v1129_v52, %v1129_v52  ;;  %v1871_v54 = vpop.f32.mrb[13].mxu0  ;;  %v1765_v52 = vld [vmem:[%s586_s4] ss:$0 sm:$0xff] }
 0x896   : > { %v1132_v55 = vpop.f32.mrb[14].mxu0 }
 0x897   : > { %v1872_v57 = vpop.f32.mrb[15].mxu0  ;;  %1876 = vmatmul.mubr.msk.bf16.vlgmr.msra.gmra.mrb[20].mxu1 %vm704_vm4, %v1135_v53 }
 0x898   : > { %1887 = vmatprep.mubr.msk.bf16.mxu1 %vm2042_vm2, %v2041_v9 }
 0x89c   : > { %v1229_v58 = vpop.f32.mrb[16].mxu0 }
 0x89d   : > { %v1883_v59 = vpop.f32.mrb[17].mxu0  ;;  %v1235_v60 = vsel %vm751_vm5, %v1229_v58, -inf }
 0x89e   : > { %1236 = vmax.xlane.f32.xlu1 %v1235_v60  ;;  %v1232_v61 = vpop.f32.mrb[18].mxu0 }
 0x89f   : > { %v1884_v62 = vpop.f32.mrb[19].mxu0 }
 0x92b   : > { %v1237_v63 = vpop.xlane.xlu1 %1236 }
 0x92c   : > { %v1238_v0 = vsub.f32 %v1229_v58, %v1237_v63 }
 0x92e   : > { %v1239_v2 = vmul.f32 1.442695, %v1238_v0 }
 0x930   : > { %1993 = vpow2.f32 %v1239_v2 }
 0x93a   : > { %v1994_v3 = vpop.eup %1993 }
 0x93b   : > { %v1241_v4 = vsel %vm751_vm5, %v1994_v3, 0.0 }
 0x93c   : > { %1242 = vadd.xlane.f32.xlu0 %v1241_v4 }
 0x952   : > { %1247 = vrot.lane.b32.xlu0 %v2244_v22, %s2054_s23 }
 0x96a   : > { %v1178_v7 = vpop.f32.mrb[20].mxu1 }
 0x96b   : > { %v1184_v8 = vadd.f32 %v1178_v7, %v2297_v27  ;;  %v1877_v10 = vpop.f32.mrb[21].mxu1 }
 0x96c   : > { %v1181_v11 = vpop.f32.mrb[22].mxu1 }
 0x96d   : > { %v1878_v12 = vpop.f32.mrb[23].mxu1 }
 0x9c9   : > { %v1243_v13 = vpop.xlane.xlu0 %1242 }
 0x9ca   : > { %1995 = vrcp.f32 %v1243_v13 }
 0x9cd   : > { %v1248_v14 = vpop.permute.xlu0 %1247 }
 0x9ce   : > { %v1253_v15 = vand.u32 %v1248_v14, %v2268_v56 }
 0x9d0   : > { %1886 = vmatpush3.bf16.msra.mxu1 %v1253_v15 }
 0x9d1   : > { %1897 = vmatprep.subr.bf16.mxu1 %v2041_v9 }
 0x9d4   : > { %v1996_v22 = vpop.eup %1995 }
 0x9d5   : > { %v1245_v16 = vmul.f32 %v1996_v22, %v1994_v3 }
 0x9d7   : > { %v1246_v17 = vpack.c.bf16 %v1245_v16, %v1245_v16 }
 0x9d9   : > { %1888 = vmatmul.mubr.msk.bf16.vlgmr.msra.gmra.mrb[24].mxu1 %vm766_vm8, %v1246_v17 }
 0x9da   : > { %1901 = vmatprep.mubr.msk.bf16.mxu1 %vm2042_vm2, %v2041_v9  ;;  %1898 = vmatpush3.bf16.msra.mxu1 %v1973_v37 }
 0x9db   : > { %1899 = vmatprep.subr.bf16.mxu1 %v2041_v9 }
 0x9de   : > { %1900 = vmatpush3.bf16.msra.mxu1 %v1974_v38 }
 0xaac   : > { %v1289_v18 = vpop.f32.mrb[24].mxu1 }
 0xaad   : > { %v1295_v19 = vpack.c.bf16 %v1289_v18, %v1289_v18  ;;  %v1889_v20 = vpop.f32.mrb[25].mxu1 }
 0xaae   : > { %v1292_v21 = vpop.f32.mrb[26].mxu1 }
 0xaaf   : > { %v1890_v23 = vpop.f32.mrb[27].mxu1  ;;  %1894 = vmatmul.mubr.msk.bf16.vlgmr.msra.gmra.mrb[20].mxu0 %vm704_vm4, %v1295_v19 }
 0xab0   : > { %1913 = vmatprep.mubr.msk.bf16.mxu0 %vm2042_vm2, %v2041_v9  ;;  %1906 = vmatpush3.bf16.msra.mxu0 %v1975_v48 }
 0xab1   : > { %1907 = vmatprep.subr.bf16.mxu0 %v2041_v9 }
 0xab4   : > { %1908 = vmatpush3.bf16.msra.mxu0 %v1976_v49 }
 0xab5   : > { %1909 = vmatprep.subr.bf16.mxu0 %v2041_v9 }
 0xab8   : > { %1910 = vmatpush3.bf16.msra.mxu0 %v1977_v50 }
 0xab9   : > { %1911 = vmatprep.subr.bf16.mxu0 %v2041_v9 }
 0xabc   : > { %1912 = vmatpush3.bf16.msra.mxu0 %v1978_v51 }
 0xb82   : > { %v1338_v56 = vpop.f32.mrb[20].mxu0 }
 0xb83   : > { %v1344_v24 = vadd.f32 %v1338_v56, %v1184_v8  ;;  %v1895_v25 = vpop.f32.mrb[21].mxu0 }
 0xb84   : > { %v1341_v27 = vpop.f32.mrb[22].mxu0 }
 0xb85   : > { %v1345_v28 = vadd.f32 %v1344_v24, %v2215_v1  ;;  %v1896_v29 = vpop.f32.mrb[23].mxu0 }
 0xb87   : > { %v1353_v30 = vadd.f32 %v1762_v26, %v1345_v28 }
 0xb89   : > { %v1356_v31 = vsel %vm610_vm1, %v1353_v30, 0.0 }
 0xb8a   : > { %1357 = vadd.xlane.f32.xlu1 %v1356_v31 }
 0xc17   : > { %v1358_v32 = vpop.xlane.xlu1 %1357 }
 0xc18   : > { %v1359_v33 = vmul.f32 0.03125, %v1358_v32 }
 0xc1a   : > { %v1360_v34 = vsub.f32 %v1353_v30, %v1359_v33 }
 0xc1c   : > { %v1361_v35 = vmul.f32 %v1360_v34, %v1360_v34 }
 0xc1e   : > { %v1362_v36 = vsel %vm610_vm1, %v1361_v35, 0.0 }
 0xc1f   : > { %1363 = vadd.xlane.f32.xlu1 %v1362_v36 }
 0xcac   : > { %v1364_v1 = vpop.xlane.xlu1 %1363 }
 0xcad   : > { %v1365_v39 = vmul.f32 0.03125, %v1364_v1 }
 0xcaf   : > { %v1366_v40 = vadd.f32 1e-05, %v1365_v39 }
 0xcb1   : > { %1997 = vrsqrt.f32 %v1366_v40 }
 0xcbb   : > { %v1998_v41 = vpop.eup %1997 }
 0xcbc   : > { %v1368_v43 = vmul.f32 %v1998_v41, %v1360_v34 }
 0xcbe   : > { %v1375_v45 = vmul.f32 %v1763_v42, %v1368_v43 }
 0xcc0   : > { %v1382_v46 = vadd.f32 %v1764_v44, %v1375_v45 }
 0xcc2   : > { %v1383_v47 = vpack.c.bf16 %v1382_v46, %v1382_v46 }
 0xcc4   : > { %1902 = vmatmul.mubr.msk.bf16.vlgmr.msra.gmra.mrb[28].mxu1 %vm656_vm3, %v1383_v47 }
 0xd97   : > { %v1444_v53 = vpop.f32.mrb[28].mxu1 }
 0xd98   : > { %v1445_v54 = vadd.f32 %v1765_v52, %v1444_v53  ;;  %v1903_v55 = vpop.f32.mrb[29].mxu1 }
 0xd99   : > { %v1447_v57 = vpop.f32.mrb[30].mxu1 }
 0xd9a   : > { %v1451_v58 = vmul.f32 0.044715, %v1445_v54  ;;  %v1904_v59 = vpop.f32.mrb[31].mxu1  ;;  %v1450_v9 = vmul.f32 0.5, %v1445_v54 }
 0xd9c   : > { %v1452_v60 = vmul.f32 %v1451_v58, %v1445_v54 }
 0xd9e   : > { %v1453_v61 = vmul.f32 %v1452_v60, %v1445_v54 }
 0xda0   : > { %v1454_v62 = vadd.f32 %v1453_v61, %v1445_v54 }
 0xda2   : > { %v1455_v63 = vmul.f32 0.7978846, %v1454_v62 }
 0xda4   : > { %1999 = vtanh.f32 %v1455_v63 }
 0xdae   : > { %v2000_v0 = vpop.eup %1999 }
 0xdaf   : > { %v1457_v2 = vadd.f32 1.0, %v2000_v0 }
 0xdb1   : > { %v1458_v3 = vmul.f32 %v1457_v2, %v1450_v9 }
 0xdb3   : > { %v1459_v4 = vpack.c.bf16 %v1458_v3, %v1458_v3 }
 0xdb5   : > { %1914 = vmatmul.mubr.msk.bf16.vlgmr.msra.gmra.mrb[24].mxu0 %vm1499_vm10, %v1459_v4 }
 0xe87   : > { %1548 = sbr.rel (%p1775_p8) target bundleno = 3734 (0xe96), region = 76 }
 0xe88   : > { %v1537_v6 = vpop.f32.mrb[24].mxu0 }
 0xe89   : > { %v1538_v7 = vadd.f32 %v1769_v5, %v1537_v6  ;;  %v1915_v8 = vpop.f32.mrb[25].mxu0 }
 0xe8a   : > { %v1540_v10 = vpop.f32.mrb[26].mxu0 }
 0xe8b   : > { %v1543_v11 = vadd.f32 %v1538_v7, %v1353_v30  ;;  %v1916_v12 = vpop.f32.mrb[27].mxu0 }
 0xe8d   : > { %1544 = vst.msk [vmem:[#allocation2] sm:$0x1f] %vm610_vm1, %v1543_v11 }
 0xe94   : > { %v1549_v13 = vld [vmem:[#allocation2] sm:$0x1f] }
 0xe95   : > { %1550 = vst.msk [vmem:[%s2212_s24] sm:$0x1f] %vm610_vm1, %v1549_v13 }
 0xe96 PF: > { %s2431_s27 = sld [smem:[#allocation6_spill]]  ;;  %s2432_s21 = sld [smem:[#allocation4_spill]] }
 0xe97   : > { %s2433_s22 = sld [smem:[#allocation5_spill]]  ;;  %s2434_s23 = sld [smem:[#allocation7_spill]] }
 0xe98   : > { %s2435_s24 = sld [smem:[#allocation8_spill]] }
 0xe9c   : > { %s22_s25 = sadd.s32 1, %s2431_s27  }
 0xe9d   : > { %p19_p9 = scmp.ge.s32.totalorder %s22_s25, 6  }
 0xe9f   :  { %21 = sbr.rel (!%p19_p9) target bundleno = 4 (0x4), region = 142 }

</bundles_post_ra>
